<compile_context>
chip_gen: v7x
topology: tpu7x:2x2x1
jax: 0.10.0
libtpu: 0.0.40
codegen_flags: <defaults>
</compile_context>

<pallas_src>
import jax
import jax.numpy as jnp
from jax.experimental import pallas as pl
from jax.experimental.pallas import tpu as pltpu


# ---------------------------------------------------------------------------
# Kernels
# ---------------------------------------------------------------------------
def _se_block_flat_kernel(x_ref, pw1_ref, w2t_ref, expand_ref, o_ref):
    """Lane-dense path: x/o are (TB, C*L) slabs.

    pw1_ref    : (C*L, H)  pooling (1/L) folded into W1.T -> squeeze + Linear1
    w2t_ref    : (H, C)    = W2.T
    expand_ref : (C, C*L)  0/1 matrix; gate broadcast over L as a matmul
    """
    x = x_ref[...]                                                      # native dtype
    # Squeeze + first Linear in one MXU pass, f32 accumulation.
    h = jnp.maximum(
        jnp.dot(x, pw1_ref[...], preferred_element_type=jnp.float32), 0.0)   # (TB, H)
    # Second Linear + Sigmoid (tiny, f32).
    s = jax.nn.sigmoid(
        jnp.dot(h, w2t_ref[...], preferred_element_type=jnp.float32))        # (TB, C)
    # Broadcast the per-channel gate over the L lanes via the 0/1 expand matmul.
    gate = jnp.dot(s.astype(expand_ref.dtype), expand_ref[...],
                   preferred_element_type=jnp.float32)                       # (TB, C*L)
    o_ref[...] = (x * gate.astype(o_ref.dtype)).astype(o_ref.dtype)


def _se_block_ncl_kernel(x_ref, w1t_ref, w2t_ref, o_ref):
    """Fallback path: x/o are (TB, C, L) blocks (L already lane dense)."""
    y = jnp.mean(x_ref[...], axis=-1, dtype=jnp.float32)                     # (TB, C)
    h = jnp.maximum(
        jnp.dot(y, w1t_ref[...], preferred_element_type=jnp.float32), 0.0)   # (TB, H)
    s = jax.nn.sigmoid(
        jnp.dot(h, w2t_ref[...], preferred_element_type=jnp.float32))        # (TB, C)
    o_ref[...] = (x_ref[...] * s[:, :, None].astype(o_ref.dtype)).astype(o_ref.dtype)


# ---------------------------------------------------------------------------
# Wrapper helpers
# ---------------------------------------------------------------------------
def _cdiv(a, b):
    return -(-a // b)


def _round_up(a, m):
    return _cdiv(a, m) * m


def _vmem_capacity_bytes():
    """Best-effort VMEM capacity query; conservative 64 MiB (v7x-sized) default."""
    try:
        info = pltpu.get_tpu_info()
        for name in ("vmem_capacity_bytes", "vmem_size_bytes", "vmem_bytes"):
            v = getattr(info, name, None)
            if v:
                return int(v)
    except Exception:
        pass
    return 64 << 20


def _choose_tiling(batch, row_bytes, budget_bytes, sublane):
    """Rows per tile (multiple of `sublane`), padded batch, grid length.

    Grid is forced to >= 2 steps and an even count so the "parallel" axis
    splits evenly across v7x's two TensorCores; v5e/v6e (1 TC) are unaffected.
    """
    cap = max(sublane, (budget_bytes // max(row_bytes, 1)) // sublane * sublane)
    grid = max(2, _cdiv(batch, cap))
    if grid % 2:
        grid += 1
    tb = min(cap, _round_up(_cdiv(batch, grid), sublane))
    return tb, grid * tb, grid


def _const_spec(shape, buffered):
    idx = lambda g: (0,) * len(shape)
    if buffered:
        # Block index never changes across the grid -> single buffer; the
        # reclaimed VMEM goes to larger batch tiles (matters most on v7x).
        return pl.BlockSpec(shape, idx, pipeline_mode=pl.Buffered(1))
    return pl.BlockSpec(shape, idx)


# ---------------------------------------------------------------------------
# Public wrapper
# ---------------------------------------------------------------------------
def se_block(x, w1, w2, *, tile_budget_bytes=None):
    """x: (B, C, L); w1: (H, C); w2: (C, H)  (PyTorch nn.Linear weight layout)."""
    B, C, L = x.shape
    H = w1.shape[0]
    assert w1.shape == (H, C) and w2.shape == (C, H)

    CL = C * L
    itemsize = jnp.dtype(x.dtype).itemsize
    is_16bit_float = jnp.issubdtype(x.dtype, jnp.floating) and itemsize == 2
    sublane = 16 if itemsize == 2 else (32 if itemsize == 1 else 8)

    # ---- generation-aware VMEM budgets --------------------------------------
    vmem_cap = _vmem_capacity_bytes()
    if vmem_cap >= (96 << 20):            # 128 MiB parts (v5e / v6e)
        tile_budget = 8 << 20
        vmem_ceiling = 100 << 20
    else:                                 # 64 MiB part (v7x) or unknown
        tile_budget = 4 << 20
        vmem_ceiling = 48 << 20
    if tile_budget_bytes is not None:
        tile_budget = int(tile_budget_bytes)
    const_budget = vmem_ceiling // 8

    # ---- trace-time constants ------------------------------------------------
    # Native-dtype MXU operands for bf16 x (fast path); f32 otherwise.
    mm_dtype = x.dtype if is_16bit_float else jnp.float32
    expand_dtype = x.dtype if is_16bit_float else jnp.float32   # 0/1 exact in bf16
    w1t = w1.T.astype(jnp.float32)                              # (C, H)
    w2t = w2.T.astype(jnp.float32)                              # (H, C)
    # Pooling (1/L) folded into W1: pw1[c*L + l, h] = W1[h, c] / L.
    pw1 = (jnp.repeat(w1t, L, axis=0) / float(L)).astype(mm_dtype)   # (C*L, H)

    flat_const_bytes = (CL * H * jnp.dtype(mm_dtype).itemsize
                        + H * C * 4
                        + C * CL * jnp.dtype(expand_dtype).itemsize)
    # Lane-dense path whenever L leaves lanes mostly empty and constants fit VMEM.
    use_flat = (H > 0) and (L % 128 != 0) and (flat_const_bytes <= const_budget)

    row_bytes = CL * itemsize
    TB, B_pad, grid_n = _choose_tiling(B, row_bytes, tile_budget, sublane)
    tile_bytes = TB * row_bytes
    const_bytes = flat_const_bytes if use_flat else (2 * C * H * 4)
    # double-buffered in+out tiles + (worst-case double-buffered) constants
    # + f32 temporaries (gate) + slack
    needed = 4 * tile_bytes + 2 * const_bytes + 2 * TB * CL * 4 + (2 << 20)
    vmem_limit = int(min(max(needed, 32 << 20), vmem_ceiling))
    compiler_params = pltpu.CompilerParams(
        dimension_semantics=("parallel",),
        vmem_limit_bytes=vmem_limit,
    )

    if use_flat:
        expand = jnp.repeat(jnp.eye(C, dtype=expand_dtype), L, axis=1)   # (C, C*L)
        x2 = x.reshape(B, CL)
        if B_pad != B:
            x2 = jnp.pad(x2, ((0, B_pad - B), (0, 0)))

        cost = pl.CostEstimate(
            flops=int(2 * B_pad * CL * H + 2 * B_pad * H * C
                      + 2 * B_pad * C * CL + B_pad * CL),
            transcendentals=int(B_pad * C),
            bytes_accessed=int(2 * B_pad * CL * itemsize + flat_const_bytes),
        )

        def run(buffered):
            grid_spec = pltpu.PrefetchScalarGridSpec(
                num_scalar_prefetch=0,
                grid=(grid_n,),
                in_specs=[
                    pl.BlockSpec((TB, CL), lambda g: (g, 0)),
                    _const_spec((CL, H), buffered),
                    _const_spec((H, C), buffered),
                    _const_spec((C, CL), buffered),
                ],
                out_specs=pl.BlockSpec((TB, CL), lambda g: (g, 0)),
            )
            return pl.pallas_call(
                _se_block_flat_kernel,
                out_shape=jax.ShapeDtypeStruct((B_pad, CL), x.dtype),
                grid_spec=grid_spec,
                compiler_params=compiler_params,
                cost_estimate=cost,
            )(x2, pw1, w2t, expand)

        try:
            out2 = run(True)
        except Exception:   # pipeline_mode=Buffered(1) unsupported -> default buffering
            out2 = run(False)
        return out2[:B].reshape(B, C, L)

    # ---- fallback: (TB, C, L) blocks (L already a multiple of 128) -----------
    # TODO(synk): two-pass kernel tiled along L for shapes where one (C, L) row
    # plus double buffering exceeds VMEM (relevant on v7x's 64 MiB part).
    xp = x
    if B_pad != B:
        xp = jnp.pad(x, ((0, B_pad - B), (0, 0), (0, 0)))

    cost = pl.CostEstimate(
        flops=int(2 * B_pad * C * L + 4 * B_pad * C * H + B_pad * C * L),
        transcendentals=int(B_pad * C),
        bytes_accessed=int(2 * B_pad * C * L * itemsize + 2 * C * H * 4),
    )

    def run_ncl(buffered):
        grid_spec = pltpu.PrefetchScalarGridSpec(
            num_scalar_prefetch=0,
            grid=(grid_n,),
            in_specs=[
                pl.BlockSpec((TB, C, L), lambda g: (g, 0, 0)),
                _const_spec((C, H), buffered),
                _const_spec((H, C), buffered),
            ],
            out_specs=pl.BlockSpec((TB, C, L), lambda g: (g, 0, 0)),
        )
        return pl.pallas_call(
            _se_block_ncl_kernel,
            out_shape=jax.ShapeDtypeStruct((B_pad, C, L), x.dtype),
            grid_spec=grid_spec,
            compiler_params=compiler_params,
            cost_estimate=cost,
        )(xp, w1t, w2t)

    try:
        out = run_ncl(True)
    except Exception:
        out = run_ncl(False)
    return out[:B]


def se_block_ref(x, w1, w2):
    """Pure-JAX reference mirroring the PyTorch forward."""
    y = jnp.mean(x, axis=-1)                 # (B, C)
    h = jnp.maximum(y @ w1.T, 0.0)           # (B, H)
    s = jax.nn.sigmoid(h @ w2.T)             # (B, C)
    return x * s[:, :, None]


if __name__ == "__main__":
    key = jax.random.PRNGKey(0)
    kx, k1, k2, kx2 = jax.random.split(key, 4)

    # Case 1: lane-dense (flattened) path — SE_Block(channel=64, ratio=16),
    # NCL input (B, C, L) = (2, 64, 16), f32.
    B, C, L, ratio = 2, 64, 16, 16
    H = C // ratio
    x = jax.random.normal(kx, (B, C, L), dtype=jnp.float32)
    w1 = jax.random.normal(k1, (H, C), dtype=jnp.float32) * 0.1   # (H, C)
    w2 = jax.random.normal(k2, (C, H), dtype=jnp.float32) * 0.1   # (C, H)

    out = jax.block_until_ready(se_block(x, w1, w2))
    ref = se_block_ref(x, w1, w2)
    assert out.shape == (B, C, L)
    assert jnp.allclose(out, ref, atol=1e-5, rtol=1e-5), "flat f32 path mismatch"

    # Case 2: bf16 input exercises the native-dtype (bf16-in / f32-acc) MXU path.
    xb = x.astype(jnp.bfloat16)
    outb = jax.block_until_ready(se_block(xb, w1, w2))
    refb = se_block_ref(xb.astype(jnp.float32), w1, w2)
    assert jnp.allclose(outb.astype(jnp.float32), refb, atol=5e-2, rtol=5e-2), \
        "flat bf16 path mismatch"

    # Case 3: fallback (TB, C, L) path (L multiple of 128 -> already lane dense).
    B2, L2 = 4, 128
    x2 = jax.random.normal(kx2, (B2, C, L2), dtype=jnp.float32)
    out2 = jax.block_until_ready(se_block(x2, w1, w2))
    ref2 = se_block_ref(x2, w1, w2)
    assert jnp.allclose(out2, ref2, atol=1e-5, rtol=1e-5), "ncl path mismatch"

    print("KERNEL_OK")
</pallas_src>

<mosaic_0001>
module attributes {stable_mosaic.version = 11 : i64} {
  func.func @_se_block_flat_kernel(%arg0: i32, %arg1: memref<8x1024xf32, #tpu.memory_space<vmem>>, %arg2: memref<1024x4xf32, #tpu.memory_space<vmem>>, %arg3: memref<4x64xf32, #tpu.memory_space<vmem>>, %arg4: memref<64x1024xf32, #tpu.memory_space<vmem>>, %arg5: memref<8x1024xf32, #tpu.memory_space<vmem>>) attributes {dimension_semantics = [#tpu.dimension_semantics<parallel>], iteration_bounds = array<i64: 2>, scalar_prefetch = 0 : i64, scratch_operands = 0 : i64, tpu.core_type = #tpu.core_type<tc>, window_params = [{transform_indices = @transform_0, window_bounds = array<i64: 8, 1024>}, {pipeline_mode = #tpu.pipeline_mode<synchronous>, transform_indices = @transform_1, window_bounds = array<i64: 1024, 4>}, {pipeline_mode = #tpu.pipeline_mode<synchronous>, transform_indices = @transform_2, window_bounds = array<i64: 4, 64>}, {pipeline_mode = #tpu.pipeline_mode<synchronous>, transform_indices = @transform_3, window_bounds = array<i64: 64, 1024>}, {transform_indices = @transform_4, window_bounds = array<i64: 8, 1024>}]} {
    %c0 = arith.constant 0 : index
    %c0_0 = arith.constant 0 : index
    %0 = vector.load %arg1[%c0, %c0_0] : memref<8x1024xf32, #tpu.memory_space<vmem>>, vector<8x1024xf32>
    %c0_1 = arith.constant 0 : index
    %c0_2 = arith.constant 0 : index
    %1 = vector.load %arg2[%c0_1, %c0_2] : memref<1024x4xf32, #tpu.memory_space<vmem>>, vector<1024x4xf32>
    %cst = arith.constant dense<0.000000e+00> : vector<8x4xf32>
    %2 = tpu.matmul %0, %1, %cst {dimension_numbers = #tpu.dot_dimension_numbers<[1], [0], [0], [1], [0, 0, 1, 1], [], []>} : vector<8x1024xf32>, vector<1024x4xf32>, vector<8x4xf32> -> vector<8x4xf32>
    %cst_3 = arith.constant 0.000000e+00 : f32
    %3 = vector.broadcast %cst_3 : f32 to vector<8x4xf32>
    %4 = arith.maximumf %2, %3 : vector<8x4xf32>
    %c0_4 = arith.constant 0 : index
    %c0_5 = arith.constant 0 : index
    %5 = vector.load %arg3[%c0_4, %c0_5] : memref<4x64xf32, #tpu.memory_space<vmem>>, vector<4x64xf32>
    %cst_6 = arith.constant dense<0.000000e+00> : vector<8x64xf32>
    %6 = tpu.matmul %4, %5, %cst_6 {dimension_numbers = #tpu.dot_dimension_numbers<[1], [0], [0], [1], [0, 0, 1, 1], [], []>} : vector<8x4xf32>, vector<4x64xf32>, vector<8x64xf32> -> vector<8x64xf32>
    %7 = arith.negf %6 : vector<8x64xf32>
    %8 = math.exp %7 : vector<8x64xf32>
    %cst_7 = arith.constant 1.000000e+00 : f32
    %9 = vector.broadcast %cst_7 : f32 to vector<8x64xf32>
    %10 = arith.addf %9, %8 : vector<8x64xf32>
    %11 = arith.divf %9, %10 : vector<8x64xf32>
    %c0_8 = arith.constant 0 : index
    %c0_9 = arith.constant 0 : index
    %12 = vector.load %arg4[%c0_8, %c0_9] : memref<64x1024xf32, #tpu.memory_space<vmem>>, vector<64x1024xf32>
    %cst_10 = arith.constant dense<0.000000e+00> : vector<8x1024xf32>
    %13 = tpu.matmul %11, %12, %cst_10 {dimension_numbers = #tpu.dot_dimension_numbers<[1], [0], [0], [1], [0, 0, 1, 1], [], []>} : vector<8x64xf32>, vector<64x1024xf32>, vector<8x1024xf32> -> vector<8x1024xf32>
    %14 = arith.mulf %0, %13 : vector<8x1024xf32>
    %c0_11 = arith.constant 0 : index
    %c0_12 = arith.constant 0 : index
    %15 = vector.load %arg5[%c0_11, %c0_12] : memref<8x1024xf32, #tpu.memory_space<vmem>>, vector<8x1024xf32>
    tpu.vector_store %arg5[%c0_11, %c0_12], %14 {strides = array<i32>} : memref<8x1024xf32, #tpu.memory_space<vmem>>, vector<8x1024xf32>,
    return
  }
  func.func @transform_0(%arg0: i32) -> (i32, i32) {
    %c0_i32 = arith.constant 0 : i32
    %c0_i32_0 = arith.constant 0 : i32
    return %arg0, %c0_i32 : i32, i32
  }
  func.func @transform_1(%arg0: i32) -> (i32, i32) {
    %c0_i32 = arith.constant 0 : i32
    %c0_i32_0 = arith.constant 0 : i32
    %c0_i32_1 = arith.constant 0 : i32
    return %c0_i32, %c0_i32_0 : i32, i32
  }
  func.func @transform_2(%arg0: i32) -> (i32, i32) {
    %c0_i32 = arith.constant 0 : i32
    %c0_i32_0 = arith.constant 0 : i32
    %c0_i32_1 = arith.constant 0 : i32
    return %c0_i32, %c0_i32_0 : i32, i32
  }
  func.func @transform_3(%arg0: i32) -> (i32, i32) {
    %c0_i32 = arith.constant 0 : i32
    %c0_i32_0 = arith.constant 0 : i32
    %c0_i32_1 = arith.constant 0 : i32
    return %c0_i32, %c0_i32_0 : i32, i32
  }
  func.func @transform_4(%arg0: i32) -> (i32, i32) {
    %c0_i32 = arith.constant 0 : i32
    %c0_i32_0 = arith.constant 0 : i32
    return %arg0, %c0_i32 : i32, i32
  }
}

module attributes {stable_mosaic.version = 11 : i64} {
  func.func @_se_block_flat_kernel(%arg0: i32, %arg1: memref<8x1024xf32, #tpu.memory_space<vmem>>, %arg2: memref<1024x4xf32, #tpu.memory_space<vmem>>, %arg3: memref<4x64xf32, #tpu.memory_space<vmem>>, %arg4: memref<64x1024xf32, #tpu.memory_space<vmem>>, %arg5: memref<8x1024xf32, #tpu.memory_space<vmem>>) attributes {dimension_semantics = [#tpu.dimension_semantics<parallel>], iteration_bounds = array<i64: 2>, scalar_prefetch = 0 : i64, scratch_operands = 0 : i64, tpu.core_type = #tpu.core_type<tc>, window_params = [{transform_indices = @transform_0, window_bounds = array<i64: 8, 1024>}, {pipeline_mode = #tpu.pipeline_mode<synchronous>, transform_indices = @transform_1, window_bounds = array<i64: 1024, 4>}, {pipeline_mode = #tpu.pipeline_mode<synchronous>, transform_indices = @transform_2, window_bounds = array<i64: 4, 64>}, {pipeline_mode = #tpu.pipeline_mode<synchronous>, transform_indices = @transform_3, window_bounds = array<i64: 64, 1024>}, {transform_indices = @transform_4, window_bounds = array<i64: 8, 1024>}]} {
    %c0 = arith.constant 0 : index
    %c0_0 = arith.constant 0 : index
    %0 = vector.load %arg1[%c0, %c0_0] : memref<8x1024xf32, #tpu.memory_space<vmem>>, vector<8x1024xf32>
    %c0_1 = arith.constant 0 : index
    %c0_2 = arith.constant 0 : index
    %1 = vector.load %arg2[%c0_1, %c0_2] : memref<1024x4xf32, #tpu.memory_space<vmem>>, vector<1024x4xf32>
    %cst = arith.constant dense<0.000000e+00> : vector<8x4xf32>
    %2 = tpu.matmul %0, %1, %cst {dimension_numbers = #tpu.dot_dimension_numbers<[1], [0], [0], [1], [0, 0, 1, 1], [], []>} : vector<8x1024xf32>, vector<1024x4xf32>, vector<8x4xf32> -> vector<8x4xf32>
    %cst_3 = arith.constant 0.000000e+00 : f32
    %3 = vector.broadcast %cst_3 : f32 to vector<8x4xf32>
    %4 = arith.maximumf %2, %3 : vector<8x4xf32>
    %c0_4 = arith.constant 0 : index
    %c0_5 = arith.constant 0 : index
    %5 = vector.load %arg3[%c0_4, %c0_5] : memref<4x64xf32, #tpu.memory_space<vmem>>, vector<4x64xf32>
    %cst_6 = arith.constant dense<0.000000e+00> : vector<8x64xf32>
    %6 = tpu.matmul %4, %5, %cst_6 {dimension_numbers = #tpu.dot_dimension_numbers<[1], [0], [0], [1], [0, 0, 1, 1], [], []>} : vector<8x4xf32>, vector<4x64xf32>, vector<8x64xf32> -> vector<8x64xf32>
    %7 = arith.negf %6 : vector<8x64xf32>
    %8 = math.exp %7 : vector<8x64xf32>
    %cst_7 = arith.constant 1.000000e+00 : f32
    %9 = vector.broadcast %cst_7 : f32 to vector<8x64xf32>
    %10 = arith.addf %9, %8 : vector<8x64xf32>
    %11 = arith.divf %9, %10 : vector<8x64xf32>
    %c0_8 = arith.constant 0 : index
    %c0_9 = arith.constant 0 : index
    %12 = vector.load %arg4[%c0_8, %c0_9] : memref<64x1024xf32, #tpu.memory_space<vmem>>, vector<64x1024xf32>
    %cst_10 = arith.constant dense<0.000000e+00> : vector<8x1024xf32>
    %13 = tpu.matmul %11, %12, %cst_10 {dimension_numbers = #tpu.dot_dimension_numbers<[1], [0], [0], [1], [0, 0, 1, 1], [], []>} : vector<8x64xf32>, vector<64x1024xf32>, vector<8x1024xf32> -> vector<8x1024xf32>
    %14 = arith.mulf %0, %13 : vector<8x1024xf32>
    %c0_11 = arith.constant 0 : index
    %c0_12 = arith.constant 0 : index
    %15 = vector.load %arg5[%c0_11, %c0_12] : memref<8x1024xf32, #tpu.memory_space<vmem>>, vector<8x1024xf32>
    tpu.vector_store %arg5[%c0_11, %c0_12], %14 {strides = array<i32>} : memref<8x1024xf32, #tpu.memory_space<vmem>>, vector<8x1024xf32>,
    return
  }
  func.func @transform_0(%arg0: i32) -> (i32, i32) {
    %c0_i32 = arith.constant 0 : i32
    %c0_i32_0 = arith.constant 0 : i32
    return %arg0, %c0_i32 : i32, i32
  }
  func.func @transform_1(%arg0: i32) -> (i32, i32) {
    %c0_i32 = arith.constant 0 : i32
    %c0_i32_0 = arith.constant 0 : i32
    %c0_i32_1 = arith.constant 0 : i32
    return %c0_i32, %c0_i32_0 : i32, i32
  }
  func.func @transform_2(%arg0: i32) -> (i32, i32) {
    %c0_i32 = arith.constant 0 : i32
    %c0_i32_0 = arith.constant 0 : i32
    %c0_i32_1 = arith.constant 0 : i32
    return %c0_i32, %c0_i32_0 : i32, i32
  }
  func.func @transform_3(%arg0: i32) -> (i32, i32) {
    %c0_i32 = arith.constant 0 : i32
    %c0_i32_0 = arith.constant 0 : i32
    %c0_i32_1 = arith.constant 0 : i32
    return %c0_i32, %c0_i32_0 : i32, i32
  }
  func.func @transform_4(%arg0: i32) -> (i32, i32) {
    %c0_i32 = arith.constant 0 : i32
    %c0_i32_0 = arith.constant 0 : i32
    return %arg0, %c0_i32 : i32, i32
  }
}

</mosaic_0001>

<bundles_post_ra>
// kernel: tpu_custom_call.1
= control target key start
LH: loop header
LB: loop body
LE: loop exit
PB: predicated region body
PF: predicated region fallthrough
CT: control target
= control target key end

     0   :  { %9 = vsyncpa [#allocation3], 0  ;;  %s2377_s0 = inlined_call_operand.vmem [shape: f32[16,1024], index: 0, kind: input, shape index: {}]   ;;  %s2378_s1 = inlined_call_operand.vmem [shape: f32[1024,4], index: 1, kind: input, shape index: {}]   ;;  %s2379_s2 = inlined_call_operand.vmem [shape: f32[4,64], index: 2, kind: input, shape index: {}]   ;;  %s2380_s3 = inlined_call_operand.vmem [shape: f32[64,1024], index: 3, kind: input, shape index: {}]   ;;  %s2381_s4 = inlined_call_operand.hbm [shape: f32[16,1024], index: 4, kind: output, shape index: {}]  }
   0x1   :  { %11 = vsyncpa [#allocation3 + $0x1], 0  ;;  %s1637_s15 = smov 0   ;;  %s1639_s16 = smov 0  }
   0x2   :  { %s1641_s17 = smov 0   ;;  %s1643_s18 = smov 0  }
   0x3 LB: > { %s1658_s19 = sadd.s32 4294967295, %s1607_s18   ;;  %s1140_s20 = sadd.s32 4294967294, %s1607_s18   ;;  %s1607_s18 = sphi %s1643_s18, %s2387_s18   ;;  %s1603_s17 = sphi %s1641_s17, %s2386_s17   ;;  %s1599_s16 = sphi %s1639_s16, %s2385_s16   ;;  %s1595_s15 = sphi %s1637_s15, %s2384_s15  }
   0x4   : > { %s1662_s21 = sadd.s32 1, %s1607_s18   ;;  %s113_s22 = sadd.s32 1, %s1603_s17 }
   0x5   : > { %s110_s23 = ssub.s32 %s1607_s18, %s1662_s21  ;;  %p123_p0 = scmp.ne.s32.totalorder %s1603_s17, %s1599_s16 }
   0x6   : > { %p111_p1 = scmp.eq.s32.totalorder %s110_s23, 0  ;;  %p124_p2 = scmp.eq.s32.totalorder %s1658_s19, 1 }
   0x7   : > { %p129_p3 = scmp.ne.s32.totalorder %s1599_s16, %s1595_s15  ;;  %p130_p4 = scmp.eq.s32.totalorder %s1140_s20, 1 }
   0x8   : > { %s1673_s24 = scalar_select %p111_p1, %s1603_s17, %s113_s22  }
   0x9   : > { %p1675_p5 = por %p124_p2, %p123_p0  ;;  %p1679_p6 = por %p130_p4, %p129_p3 }
   0xa   : > { %p1143_p7 = scmp.ge.s32.totalorder %s1607_s18, 1  ;;  %p165_p8 = scmp.lt.s32.totalorder %s1607_s18, 3 }
   0xc   : > { %p166_p9 = pnand %p1143_p7, %p165_p8 }
   0xd   : > { %v220_v0 = vld [vmem:[%s2378_s1 + $0x80] sm:$0xff] (!%p166_p9)  ;;  %v221_v1 = vld [vmem:[%s2378_s1 + $0x88] sm:$0xff] (!%p166_p9)  ;;  %v222_v11 = vld [vmem:[%s2378_s1 + $0x90] sm:$0xff] (!%p166_p9)  ;;  %p191_p10 = scmp.lt.s32.totalorder (!%p166_p9), %s1658_s19, 1  ;;  %vm618_vm0 = vcmask (!%p166_p9), 1043456   ;;  %vm1610_vm1 = vmmov (!%p166_p9), 0  }
   0xe   : > { %169 = sbr.rel (%p166_p9) target bundleno = 785 (0x311), region = 36  ;;  %v252_v2 = vld [vmem:[%s2378_s1 + $0x180] sm:$0xff] (!%p166_p9)  ;;  %v1308_v3 = vpack.c.bf16 (!%p166_p9), %v221_v1, %v220_v0  ;;  %v253_v4 = vld [vmem:[%s2378_s1 + $0x188] sm:$0xff] (!%p166_p9)  ;;  %v223_v13 = vld [vmem:[%s2378_s1 + $0x98] sm:$0xff] (!%p166_p9)  ;;  %vm614_vm2 = vcmask (!%p166_p9), 31744   ;;  %vm762_vm3 = vcmask (!%p166_p9), 523264  }
   0xf   : > { %v204_v5 = vld [vmem:[%s2378_s1] sm:$0xff] (!%p166_p9)  ;;  %v205_v6 = vld [vmem:[%s2378_s1 + $0x8] sm:$0xff] (!%p166_p9)  ;;  %v1340_v7 = vpack.c.bf16 (!%p166_p9), %v253_v4, %v252_v2  ;;  %v254_v14 = vld [vmem:[%s2378_s1 + $0x190] sm:$0xff] (!%p166_p9)  ;;  %v1312_v16 = vpack.c.bf16 (!%p166_p9), %v223_v13, %v222_v11  ;;  %s188_s12 = sand.u32 (!%p166_p9), 1, %s1599_s16   ;;  %s1160_s13 = sshll.u32 (!%p166_p9), %s1658_s19, 10 }
  0x10   : > { %v1310_v8 = vpack.c.bf16 (!%p166_p9), %v205_v6, %v204_v5  ;;  %v236_v9 = vld [vmem:[%s2378_s1 + $0x100] sm:$0xff] (!%p166_p9)  ;;  %v237_v10 = vld [vmem:[%s2378_s1 + $0x108] sm:$0xff] (!%p166_p9)  ;;  %1309 = vmatprep.subr.bf16.mxu0 (!%p166_p9), %v1308_v3  ;;  %v255_v15 = vld [vmem:[%s2378_s1 + $0x198] sm:$0xff] (!%p166_p9)  ;;  %s2333_s23 = scalar_lea.hbm (!%p166_p9), %s2381_s4, %s1160_s13  ;;  %s1611_s27 = smov (!%p166_p9), [#allocation2]  }
  0x11   : > { %v1342_v12 = vpack.c.bf16 (!%p166_p9), %v237_v10, %v236_v9  ;;  %1341 = vmatprep.subr.bf16.mxu1 (!%p166_p9), %v1340_v7  ;;  %v1344_v17 = vpack.c.bf16 (!%p166_p9), %v255_v15, %v254_v14  ;;  %v206_v18 = vld [vmem:[%s2378_s1 + $0x10] sm:$0xff] (!%p166_p9)  ;;  %v207_v19 = vld [vmem:[%s2378_s1 + $0x18] sm:$0xff] (!%p166_p9)  ;;  %v224_v23 = vld [vmem:[%s2378_s1 + $0xa0] sm:$0xff] (!%p166_p9)  ;;  %s1549_s28 = sshll.u32 (!%p166_p9), %s1611_s27, 4  ;;  %s1550_s28 = int_to_ptr.vmem [resolvable:$false] %s1549_s28 }
  0x12   : > { %1311 = vmatpush3.bf16.msra.mxu0 (!%p166_p9), %v1310_v8  ;;  %v238_v20 = vld [vmem:[%s2378_s1 + $0x110] sm:$0xff] (!%p166_p9)  ;;  %v1314_v21 = vpack.c.bf16 (!%p166_p9), %v207_v19, %v206_v18  ;;  %v239_v22 = vld [vmem:[%s2378_s1 + $0x118] sm:$0xff] (!%p166_p9)  ;;  %v225_v24 = vld [vmem:[%s2378_s1 + $0xa8] sm:$0xff] (!%p166_p9)  ;;  %s1551_s30 = scalar_lea.vmem (!%p166_p9), %s1550_s28, 2048 }
  0x13   : > { %1343 = vmatpush3.bf16.msra.mxu1 (!%p166_p9), %v1342_v12  ;;  %1313 = vmatprep.subr.bf16.mxu0 (!%p166_p9), %v1312_v16  ;;  %v1346_v25 = vpack.c.bf16 (!%p166_p9), %v239_v22, %v238_v20  ;;  %v1316_v26 = vpack.c.bf16 (!%p166_p9), %v225_v24, %v224_v23  ;;  %v256_v27 = vld [vmem:[%s2378_s1 + $0x1a0] sm:$0xff] (!%p166_p9)  ;;  %v257_v28 = vld [vmem:[%s2378_s1 + $0x1a8] sm:$0xff] (!%p166_p9)  ;;  %v226_v35 = vld [vmem:[%s2378_s1 + $0xb0] sm:$0xff] (!%p166_p9) }
  0x14   : > { %1345 = vmatprep.subr.bf16.mxu1 (!%p166_p9), %v1344_v17  ;;  %v208_v29 = vld [vmem:[%s2378_s1 + $0x20] sm:$0xff] (!%p166_p9)  ;;  %v1348_v30 = vpack.c.bf16 (!%p166_p9), %v257_v28, %v256_v27  ;;  %v209_v31 = vld [vmem:[%s2378_s1 + $0x28] sm:$0xff] (!%p166_p9)  ;;  %v227_v36 = vld [vmem:[%s2378_s1 + $0xb8] sm:$0xff] (!%p166_p9) }
  0x15   : > { %v240_v32 = vld [vmem:[%s2378_s1 + $0x120] sm:$0xff]  ;;  %v241_v33 = vld [vmem:[%s2378_s1 + $0x128] sm:$0xff]  ;;  %v1318_v34 = vpack.c.bf16 %v209_v31, %v208_v29  ;;  %v258_v37 = vld [vmem:[%s2378_s1 + $0x1b0] sm:$0xff]  ;;  %v1320_v39 = vpack.c.bf16 %v227_v36, %v226_v35  ;;  %s1797_s5 = scalar_select %p191_p10, %s1658_s19, 1 }
  0x16   : > { %1315 = vmatpush3.bf16.msra.mxu0 %v1314_v21  ;;  %v1350_v38 = vpack.c.bf16 %v241_v33, %v240_v32  ;;  %v259_v40 = vld [vmem:[%s2378_s1 + $0x1b8] sm:$0xff]  ;;  %v210_v41 = vld [vmem:[%s2378_s1 + $0x30] sm:$0xff]  ;;  %v228_v46 = vld [vmem:[%s2378_s1 + $0xc0] sm:$0xff]  ;;  %s1067_s19 = scalar_lea.sflag [#allocation3], %s188_s12 }
  0x17   : > { %1347 = vmatpush3.bf16.msra.mxu1 %v1346_v25  ;;  %1317 = vmatprep.subr.bf16.mxu0 %v1316_v26  ;;  %v211_v42 = vld [vmem:[%s2378_s1 + $0x38] sm:$0xff]  ;;  %v1352_v43 = vpack.c.bf16 %v259_v40, %v258_v37  ;;  %v242_v44 = vld [vmem:[%s2378_s1 + $0x130] sm:$0xff]  ;;  %v229_v47 = vld [vmem:[%s2378_s1 + $0xc8] sm:$0xff]  ;;  %s1159_s6 = sshll.u32 %s1797_s5, 6  ;;  %s1144_s5 = sshll.u32 %s188_s12, 6 }
  0x18   : > { %1349 = vmatprep.subr.bf16.mxu1 %v1348_v30  ;;  %v243_v45 = vld [vmem:[%s2378_s1 + $0x138] sm:$0xff]  ;;  %v260_v48 = vld [vmem:[%s2378_s1 + $0x1c0] sm:$0xff]  ;;  %v261_v49 = vld [vmem:[%s2378_s1 + $0x1c8] sm:$0xff]  ;;  %v1322_v50 = vpack.c.bf16 %v211_v42, %v210_v41  ;;  %v1324_v52 = vpack.c.bf16 %v229_v47, %v228_v46  ;;  %s1845_s29 = scalar_lea.vmem %s2377_s0, %s1159_s6  ;;  %s190_s6 = scalar_lea.vmem [#allocation2], %s1144_s5 }
  0x19   : > { %v1354_v51 = vpack.c.bf16 %v243_v45, %v242_v44  ;;  %v212_v53 = vld [vmem:[%s2378_s1 + $0x40] sm:$0xff]  ;;  %v213_v54 = vld [vmem:[%s2378_s1 + $0x48] sm:$0xff]  ;;  %v1356_v56 = vpack.c.bf16 %v261_v49, %v260_v48  ;;  %v230_v58 = vld [vmem:[%s2378_s1 + $0xd0] sm:$0xff]  ;;  %s1081_s14 = sshll.u32 %s190_s6, 4  ;;  %s2335_s14 = int_to_ptr.vmem [resolvable:$true] %s1081_s14 }
  0x1a   : > { %1319 = vmatpush3.bf16.msra.mxu0 %v1318_v34  ;;  %v244_v55 = vld [vmem:[%s2378_s1 + $0x140] sm:$0xff]  ;;  %v245_v57 = vld [vmem:[%s2378_s1 + $0x148] sm:$0xff]  ;;  %v231_v59 = vld [vmem:[%s2378_s1 + $0xd8] sm:$0xff]  ;;  %v1326_v62 = vpack.c.bf16 %v213_v54, %v212_v53  ;;  %p1552_p0 = scmp.lt.s32.totalorder %s2335_s14, %s1550_s28 }
  0x1b   : > { %1351 = vmatpush3.bf16.msra.mxu1 %v1350_v38  ;;  %1321 = vmatprep.subr.bf16.mxu0 %v1320_v39  ;;  %v262_v60 = vld [vmem:[%s2378_s1 + $0x1d0] sm:$0xff]  ;;  %v263_v61 = vld [vmem:[%s2378_s1 + $0x1d8] sm:$0xff]  ;;  %v1358_v63 = vpack.c.bf16 %v245_v57, %v244_v55  ;;  %v1328_v0 = vpack.c.bf16 %v231_v59, %v230_v58  ;;  %v232_v6 = vld [vmem:[%s2378_s1 + $0xe0] sm:$0xff] }
  0x1c   : > { %1353 = vmatprep.subr.bf16.mxu1 %v1352_v43  ;;  %v214_v1 = vld [vmem:[%s2378_s1 + $0x50] sm:$0xff]  ;;  %v215_v2 = vld [vmem:[%s2378_s1 + $0x58] sm:$0xff]  ;;  %v1360_v4 = vpack.c.bf16 %v263_v61, %v262_v60  ;;  %v233_v7 = vld [vmem:[%s2378_s1 + $0xe8] sm:$0xff] }
  0x1d   : > { %v246_v3 = vld [vmem:[%s2378_s1 + $0x150] sm:$0xff]  ;;  %v247_v5 = vld [vmem:[%s2378_s1 + $0x158] sm:$0xff]  ;;  %v264_v8 = vld [vmem:[%s2378_s1 + $0x1e0] sm:$0xff]  ;;  %v1330_v10 = vpack.c.bf16 %v215_v2, %v214_v1  ;;  %v1332_v14 = vpack.c.bf16 %v233_v7, %v232_v6 }
  0x1e   : > { %1323 = vmatpush3.bf16.msra.mxu0 %v1322_v50  ;;  %v265_v9 = vld [vmem:[%s2378_s1 + $0x1e8] sm:$0xff]  ;;  %v216_v11 = vld [vmem:[%s2378_s1 + $0x60] sm:$0xff]  ;;  %v1362_v13 = vpack.c.bf16 %v247_v5, %v246_v3  ;;  %v1866_v17 = vld [vmem:[%s1845_s29 + $0x18] sm:$0xff] }
  0x1f   : > { %1355 = vmatpush3.bf16.msra.mxu1 %v1354_v51  ;;  %1325 = vmatprep.subr.bf16.mxu0 %v1324_v52  ;;  %v217_v12 = vld [vmem:[%s2378_s1 + $0x68] sm:$0xff]  ;;  %v248_v15 = vld [vmem:[%s2378_s1 + $0x160] sm:$0xff]  ;;  %v1364_v18 = vpack.c.bf16 %v265_v9, %v264_v8  ;;  %v234_v20 = vld [vmem:[%s2378_s1 + $0xf0] sm:$0xff] }
  0x20   : > { %1357 = vmatprep.subr.bf16.mxu1 %v1356_v56  ;;  %v1863_v16 = vld [vmem:[%s1845_s29 + $0x8] sm:$0xff]  ;;  %v235_v21 = vld [vmem:[%s2378_s1 + $0xf8] sm:$0xff]  ;;  %v266_v22 = vld [vmem:[%s2378_s1 + $0x1f0] sm:$0xff]  ;;  %466 = vmatprep.mubr.f32.mxu1 %v1866_v17  ;;  %v1334_v24 = vpack.c.bf16 %v217_v12, %v216_v11 }
  0x21   : > { %v249_v19 = vld [vmem:[%s2378_s1 + $0x168] sm:$0xff]  ;;  %396 = vmatprep.mubr.f32.mxu0 %v1863_v16  ;;  %v267_v23 = vld [vmem:[%s2378_s1 + $0x1f8] sm:$0xff]  ;;  %v1336_v26 = vpack.c.bf16 %v235_v21, %v234_v20  ;;  %v218_v27 = vld [vmem:[%s2378_s1 + $0x70] sm:$0xff] }
  0x22   : > { %1327 = vmatpush3.bf16.msra.mxu0 %v1326_v62  ;;  %v1366_v25 = vpack.c.bf16 %v249_v19, %v248_v15  ;;  %v219_v28 = vld [vmem:[%s2378_s1 + $0x78] sm:$0xff]  ;;  %v250_v29 = vld [vmem:[%s2378_s1 + $0x170] sm:$0xff]  ;;  %v1368_v30 = vpack.c.bf16 %v267_v23, %v266_v22  ;;  %v284_v32 = vld [vmem:[%s2378_s1 + $0x280] sm:$0xff] }
  0x23   : > { %1359 = vmatpush3.bf16.msra.mxu1 %v1358_v63  ;;  %1329 = vmatprep.subr.bf16.mxu0 %v1328_v0  ;;  %v251_v31 = vld [vmem:[%s2378_s1 + $0x178] sm:$0xff]  ;;  %v285_v33 = vld [vmem:[%s2378_s1 + $0x288] sm:$0xff]  ;;  %v316_v34 = vld [vmem:[%s2378_s1 + $0x380] sm:$0xff]  ;;  %v1338_v36 = vpack.c.bf16 %v219_v28, %v218_v27 }
  0x24   : > { %1361 = vmatprep.subr.bf16.mxu1 %v1360_v4  ;;  %v317_v35 = vld [vmem:[%s2378_s1 + $0x388] sm:$0xff]  ;;  %v1370_v37 = vpack.c.bf16 %v251_v31, %v250_v29  ;;  %v1372_v38 = vpack.c.bf16 %v285_v33, %v284_v32  ;;  %v268_v39 = vld [vmem:[%s2378_s1 + $0x200] sm:$0xff]  ;;  %v286_v44 = vld [vmem:[%s2378_s1 + $0x290] sm:$0xff] }
  0x25   : > { %v269_v40 = vld [vmem:[%s2378_s1 + $0x208] sm:$0xff]  ;;  %v300_v41 = vld [vmem:[%s2378_s1 + $0x300] sm:$0xff]  ;;  %v1404_v42 = vpack.c.bf16 %v317_v35, %v316_v34  ;;  %v287_v45 = vld [vmem:[%s2378_s1 + $0x298] sm:$0xff] }
  0x26   : > { %1331 = vmatpush3.bf16.msra.mxu0 %v1330_v10  ;;  %v301_v43 = vld [vmem:[%s2378_s1 + $0x308] sm:$0xff]  ;;  %v318_v46 = vld [vmem:[%s2378_s1 + $0x390] sm:$0xff]  ;;  %v319_v47 = vld [vmem:[%s2378_s1 + $0x398] sm:$0xff]  ;;  %v1374_v50 = vpack.c.bf16 %v269_v40, %v268_v39  ;;  %v1376_v52 = vpack.c.bf16 %v287_v45, %v286_v44 }
  0x27   : > { %1363 = vmatpush3.bf16.msra.mxu1 %v1362_v13  ;;  %1333 = vmatprep.subr.bf16.mxu0 %v1332_v14  ;;  %v1934_v48 = vld [vmem:[%s1845_s29] sm:$0xff]  ;;  %v1937_v49 = vld [vmem:[%s1845_s29 + $0x10] sm:$0xff]  ;;  %v1406_v51 = vpack.c.bf16 %v301_v43, %v300_v41  ;;  %v271_v54 = vld [vmem:[%s2378_s1 + $0x218] sm:$0xff]  ;;  %v1408_v56 = vpack.c.bf16 %v319_v47, %v318_v46 }
  0x28   : > { %1365 = vmatprep.subr.bf16.mxu1 %v1364_v18  ;;  %v270_v53 = vld [vmem:[%s2378_s1 + $0x210] sm:$0xff]  ;;  %v303_v57 = vld [vmem:[%s2378_s1 + $0x318] sm:$0xff]  ;;  %v288_v58 = vld [vmem:[%s2378_s1 + $0x2a0] sm:$0xff] }
  0x29   : > { %v302_v55 = vld [vmem:[%s2378_s1 + $0x310] sm:$0xff]  ;;  %v289_v59 = vld [vmem:[%s2378_s1 + $0x2a8] sm:$0xff]  ;;  %v320_v60 = vld [vmem:[%s2378_s1 + $0x3a0] sm:$0xff]  ;;  %v1378_v62 = vpack.c.bf16 %v271_v54, %v270_v53 }
  0x2a   : > { %1335 = vmatpush3.bf16.msra.mxu0 %v1334_v24  ;;  %v321_v61 = vld [vmem:[%s2378_s1 + $0x3a8] sm:$0xff]  ;;  %v1410_v63 = vpack.c.bf16 %v303_v57, %v302_v55  ;;  %v1380_v0 = vpack.c.bf16 %v289_v59, %v288_v58  ;;  %v272_v1 = vld [vmem:[%s2378_s1 + $0x220] sm:$0xff]  ;;  %v290_v6 = vld [vmem:[%s2378_s1 + $0x2b0] sm:$0xff] }
  0x2b   : > { %1367 = vmatpush3.bf16.msra.mxu1 %v1366_v25  ;;  %1337 = vmatprep.subr.bf16.mxu0 %v1336_v26  ;;  %v273_v2 = vld [vmem:[%s2378_s1 + $0x228] sm:$0xff]  ;;  %v304_v3 = vld [vmem:[%s2378_s1 + $0x320] sm:$0xff]  ;;  %v1412_v4 = vpack.c.bf16 %v321_v61, %v320_v60  ;;  %v291_v7 = vld [vmem:[%s2378_s1 + $0x2b8] sm:$0xff] }
  0x2c   : > { %1369 = vmatprep.subr.bf16.mxu1 %v1368_v30  ;;  %v305_v5 = vld [vmem:[%s2378_s1 + $0x328] sm:$0xff]  ;;  %v322_v8 = vld [vmem:[%s2378_s1 + $0x3b0] sm:$0xff]  ;;  %v323_v9 = vld [vmem:[%s2378_s1 + $0x3b8] sm:$0xff]  ;;  %v1382_v10 = vpack.c.bf16 %v273_v2, %v272_v1  ;;  %v1384_v12 = vpack.c.bf16 %v291_v7, %v290_v6 }
  0x2d   : > { %v1414_v11 = vpack.c.bf16 %v305_v5, %v304_v3  ;;  %v274_v13 = vld [vmem:[%s2378_s1 + $0x230] sm:$0xff]  ;;  %v275_v14 = vld [vmem:[%s2378_s1 + $0x238] sm:$0xff]  ;;  %v1416_v18 = vpack.c.bf16 %v323_v9, %v322_v8  ;;  %v292_v20 = vld [vmem:[%s2378_s1 + $0x2c0] sm:$0xff] }
  0x2e   : > { %1339 = vmatpush3.bf16.msra.mxu0 %v1338_v36  ;;  %v306_v15 = vld [vmem:[%s2378_s1 + $0x330] sm:$0xff]  ;;  %v307_v19 = vld [vmem:[%s2378_s1 + $0x338] sm:$0xff]  ;;  %v293_v21 = vld [vmem:[%s2378_s1 + $0x2c8] sm:$0xff]  ;;  %v1386_v24 = vpack.c.bf16 %v275_v14, %v274_v13  ;;  %v1609_v13 = vmov 0.0  }
  0x2f   : > { %1371 = vmatpush3.bf16.msra.mxu1 %v1370_v37  ;;  %1373 = vmatprep.subr.bf16.mxu0 %v1372_v38  ;;  %v324_v22 = vld [vmem:[%s2378_s1 + $0x3c0] sm:$0xff]  ;;  %v325_v23 = vld [vmem:[%s2378_s1 + $0x3c8] sm:$0xff]  ;;  %v2017_v26 = vld [vmem:[%s1845_s29 + $0x38] sm:$0xff]  ;;  %v1418_v27 = vpack.c.bf16 %v307_v19, %v306_v15  ;;  %v1388_v28 = vpack.c.bf16 %v293_v21, %v292_v20 }
  0x30   : > { %1405 = vmatprep.subr.bf16.mxu1 %v1404_v42  ;;  %v2014_v25 = vld [vmem:[%s1845_s29 + $0x28] sm:$0xff]  ;;  %v276_v29 = vld [vmem:[%s2378_s1 + $0x240] sm:$0xff]  ;;  %v1420_v32 = vpack.c.bf16 %v325_v23, %v324_v22  ;;  %v294_v34 = vld [vmem:[%s2378_s1 + $0x2d0] sm:$0xff] }
  0x31   : > { %397 = vmatmul.mubr.f32.vlgmr.msra.gmra.mrb[0].mxu0 %v1934_v48  ;;  %v277_v30 = vld [vmem:[%s2378_s1 + $0x248] sm:$0xff]  ;;  %v308_v31 = vld [vmem:[%s2378_s1 + $0x340] sm:$0xff]  ;;  %v295_v35 = vld [vmem:[%s2378_s1 + $0x2d8] sm:$0xff] }
  0x32   : > { %467 = vmatmul.mubr.f32.vlgmr.msra.gmra.mrb[0].mxu1 %v1937_v49  ;;  %1375 = vmatpush3.bf16.msra.mxu0 %v1374_v50  ;;  %v309_v33 = vld [vmem:[%s2378_s1 + $0x348] sm:$0xff]  ;;  %v326_v36 = vld [vmem:[%s2378_s1 + $0x3d0] sm:$0xff]  ;;  %v327_v37 = vld [vmem:[%s2378_s1 + $0x3d8] sm:$0xff]  ;;  %v1390_v38 = vpack.c.bf16 %v277_v30, %v276_v29  ;;  %v1392_v40 = vpack.c.bf16 %v295_v35, %v294_v34 }
  0x33   : > { %1407 = vmatpush3.bf16.msra.mxu1 %v1406_v51  ;;  %1377 = vmatprep.subr.bf16.mxu0 %v1376_v52  ;;  %v1422_v39 = vpack.c.bf16 %v309_v33, %v308_v31  ;;  %v278_v41 = vld [vmem:[%s2378_s1 + $0x250] sm:$0xff]  ;;  %v279_v42 = vld [vmem:[%s2378_s1 + $0x258] sm:$0xff]  ;;  %v1424_v44 = vpack.c.bf16 %v327_v37, %v326_v36  ;;  %v296_v46 = vld [vmem:[%s2378_s1 + $0x2e0] sm:$0xff] }
  0x34   : > { %1409 = vmatprep.subr.bf16.mxu1 %v1408_v56  ;;  %536 = vmatprep.mubr.f32.mxu0 %v2014_v25  ;;  %v310_v43 = vld [vmem:[%s2378_s1 + $0x350] sm:$0xff]  ;;  %v311_v45 = vld [vmem:[%s2378_s1 + $0x358] sm:$0xff]  ;;  %v297_v47 = vld [vmem:[%s2378_s1 + $0x2e8] sm:$0xff]  ;;  %v1394_v52 = vpack.c.bf16 %v279_v42, %v278_v41 }
  0x35   : > { %606 = vmatprep.mubr.f32.mxu1 %v2017_v26  ;;  %v328_v50 = vld [vmem:[%s2378_s1 + $0x3e0] sm:$0xff]  ;;  %v329_v51 = vld [vmem:[%s2378_s1 + $0x3e8] sm:$0xff]  ;;  %v1426_v53 = vpack.c.bf16 %v311_v45, %v310_v43  ;;  %v1396_v54 = vpack.c.bf16 %v297_v47, %v296_v46  ;;  %v298_v60 = vld [vmem:[%s2378_s1 + $0x2f0] sm:$0xff] }
  0x36   : > { %1379 = vmatpush3.bf16.msra.mxu0 %v1378_v62  ;;  %v280_v55 = vld [vmem:[%s2378_s1 + $0x260] sm:$0xff]  ;;  %v281_v56 = vld [vmem:[%s2378_s1 + $0x268] sm:$0xff]  ;;  %v1428_v58 = vpack.c.bf16 %v329_v51, %v328_v50  ;;  %v299_v61 = vld [vmem:[%s2378_s1 + $0x2f8] sm:$0xff] }
  0x37   : > { %1411 = vmatpush3.bf16.msra.mxu1 %v1410_v63  ;;  %1381 = vmatprep.subr.bf16.mxu0 %v1380_v0  ;;  %v312_v57 = vld [vmem:[%s2378_s1 + $0x360] sm:$0xff]  ;;  %v313_v59 = vld [vmem:[%s2378_s1 + $0x368] sm:$0xff]  ;;  %v330_v62 = vld [vmem:[%s2378_s1 + $0x3f0] sm:$0xff]  ;;  %v1398_v0 = vpack.c.bf16 %v281_v56, %v280_v55  ;;  %v1400_v2 = vpack.c.bf16 %v299_v61, %v298_v60 }
  0x38   : > { %1413 = vmatprep.subr.bf16.mxu1 %v1412_v4  ;;  %v331_v63 = vld [vmem:[%s2378_s1 + $0x3f8] sm:$0xff]  ;;  %v1430_v1 = vpack.c.bf16 %v313_v59, %v312_v57  ;;  %v282_v3 = vld [vmem:[%s2378_s1 + $0x270] sm:$0xff]  ;;  %v699_v34 = vld [vmem:[%s2380_s3 + $0x8] sm:$0xff] }
  0x39   : > { %v283_v4 = vld [vmem:[%s2378_s1 + $0x278] sm:$0xff]  ;;  %v1432_v5 = vpack.c.bf16 %v331_v63, %v330_v62  ;;  %v314_v6 = vld [vmem:[%s2378_s1 + $0x370] sm:$0xff]  ;;  %v707_v35 = vld [vmem:[%s2380_s3 + $0x48] sm:$0xff] }
  0x3a   : > { %1383 = vmatpush3.bf16.msra.mxu0 %v1382_v10  ;;  %v315_v7 = vld [vmem:[%s2378_s1 + $0x378] sm:$0xff]  ;;  %v1402_v8 = vpack.c.bf16 %v283_v4, %v282_v3  ;;  %v2106_v10 = vld [vmem:[%s1845_s29 + $0x20] sm:$0xff]  ;;  %v1436_v37 = vpack.c.bf16 %v707_v35, %v699_v34  ;;  %v700_v43 = vld [vmem:[%s2380_s3 + $0x10] sm:$0xff] }
  0x3b   : > { %1415 = vmatpush3.bf16.msra.mxu1 %v1414_v11  ;;  %1385 = vmatprep.subr.bf16.mxu0 %v1384_v12  ;;  %v1434_v9 = vpack.c.bf16 %v315_v7, %v314_v6  ;;  %v2109_v11 = vld [vmem:[%s1845_s29 + $0x30] sm:$0xff]  ;;  %v613_v12 = vld [vmem:[%s2379_s2] sm:$0xf]  ;;  %v701_v36 = vld [vmem:[%s2380_s3 + $0x18] sm:$0xff]  ;;  %s1545_s29 = scalar_lea.vmem %s2335_s14, 1024 }
  0x3c   : > { %1417 = vmatprep.subr.bf16.mxu1 %v1416_v18  ;;  %v715_v46 = vld [vmem:[%s2380_s3 + $0x88] sm:$0xff]  ;;  %v717_v50 = vld [vmem:[%s2380_s3 + $0x98] sm:$0xff]  ;;  %v716_v57 = vld [vmem:[%s2380_s3 + $0x90] sm:$0xff]  ;;  %p1546_p11 = scmp.ne.s32.totalorder %s2335_s14, %s1545_s29  ;;  %p1553_p1 = scmp.lt.s32.totalorder %s1551_s30, %s1545_s29 }
  0x3d   : > { %v723_v47 = vld [vmem:[%s2380_s3 + $0xc8] sm:$0xff]  ;;  %v733_v62 = vld [vmem:[%s2380_s3 + $0x118] sm:$0xff]  ;;  %v740_v6 = vld [vmem:[%s2380_s3 + $0x150] sm:$0xff] }
  0x3e   : > { %1387 = vmatpush3.bf16.msra.mxu0 %v1386_v24  ;;  %v1440_v51 = vpack.c.bf16 %v723_v47, %v715_v46  ;;  %v731_v60 = vld [vmem:[%s2380_s3 + $0x108] sm:$0xff]  ;;  %p1547_p12 = pnand %p1546_p11, %p1675_p5  ;;  %p1554_p2 = por %p1553_p1, %p1552_p0 }
  0x3f   : > { %1419 = vmatpush3.bf16.msra.mxu1 %v1418_v27  ;;  %1389 = vmatprep.subr.bf16.mxu0 %v1388_v28  ;;  %v739_v61 = vld [vmem:[%s2380_s3 + $0x148] sm:$0xff] }
  0x40   : > { %1421 = vmatprep.subr.bf16.mxu1 %v1420_v32  ;;  %v1444_v63 = vpack.c.bf16 %v739_v61, %v731_v60  ;;  %v747_v7 = vld [vmem:[%s2380_s3 + $0x188] sm:$0xff]  ;;  %v745_v60 = vld [vmem:[%s2380_s3 + $0x178] sm:$0xff]  ;;  %p1548_p13 = pneg %p1547_p12 }
  0x42   : > { %1391 = vmatpush3.bf16.msra.mxu0 %v1390_v38  ;;  %v709_v38 = vld [vmem:[%s2380_s3 + $0x58] sm:$0xff]  ;;  %p1555_p3 = pnand %p1554_p2, %p1548_p13 }
  0x43   : > { %1423 = vmatpush3.bf16.msra.mxu1 %v1422_v39  ;;  %1393 = vmatprep.subr.bf16.mxu0 %v1392_v40  ;;  %v698_v39 = vld [vmem:[%s2380_s3] sm:$0xff]  ;;  %v1452_v41 = vpack.c.bf16 %v709_v38, %v701_v36 }
  0x44   : > { %1425 = vmatprep.subr.bf16.mxu1 %v1424_v44  ;;  %v706_v40 = vld [vmem:[%s2380_s3 + $0x40] sm:$0xff]  ;;  %v708_v44 = vld [vmem:[%s2380_s3 + $0x50] sm:$0xff] }
  0x45   : > { %v1438_v42 = vpack.c.bf16 %v706_v40, %v698_v39  ;;  %v1454_v45 = vpack.c.bf16 %v708_v44, %v700_v43  ;;  %v702_v38 = vld [vmem:[%s2380_s3 + $0x20] sm:$0xff]  ;;  %v704_v40 = vld [vmem:[%s2380_s3 + $0x30] sm:$0xff]  ;;  %v727_v43 = vld [vmem:[%s2380_s3 + $0xe8] sm:$0xff] }
  0x46   : > { %1395 = vmatpush3.bf16.msra.mxu0 %v1394_v52  ;;  %v725_v52 = vld [vmem:[%s2380_s3 + $0xd8] sm:$0xff]  ;;  %v710_v39 = vld [vmem:[%s2380_s3 + $0x60] sm:$0xff] }
  0x47   : > { %1427 = vmatpush3.bf16.msra.mxu1 %v1426_v53  ;;  %1397 = vmatprep.subr.bf16.mxu0 %v1396_v54  ;;  %v714_v53 = vld [vmem:[%s2380_s3 + $0x80] sm:$0xff]  ;;  %v1456_v55 = vpack.c.bf16 %v725_v52, %v717_v50  ;;  %v721_v44 = vld [vmem:[%s2380_s3 + $0xb8] sm:$0xff]  ;;  %v1470_v46 = vpack.c.bf16 %v710_v39, %v702_v38 }
  0x48   : > { %1429 = vmatprep.subr.bf16.mxu1 %v1428_v58  ;;  %v722_v54 = vld [vmem:[%s2380_s3 + $0xc0] sm:$0xff]  ;;  %v724_v58 = vld [vmem:[%s2380_s3 + $0xd0] sm:$0xff] }
  0x49   : > { %v1442_v56 = vpack.c.bf16 %v722_v54, %v714_v53  ;;  %v1458_v59 = vpack.c.bf16 %v724_v58, %v716_v57  ;;  %v718_v50 = vld [vmem:[%s2380_s3 + $0xa0] sm:$0xff]  ;;  %v720_v54 = vld [vmem:[%s2380_s3 + $0xb0] sm:$0xff]  ;;  %v743_v58 = vld [vmem:[%s2380_s3 + $0x168] sm:$0xff] }
  0x4a   : > { %1399 = vmatpush3.bf16.msra.mxu0 %v1398_v0  ;;  %v741_v0 = vld [vmem:[%s2380_s3 + $0x158] sm:$0xff] }
  0x4b   : > { %1431 = vmatpush3.bf16.msra.mxu1 %v1430_v1  ;;  %1401 = vmatprep.subr.bf16.mxu0 %v1400_v2  ;;  %v730_v1 = vld [vmem:[%s2380_s3 + $0x100] sm:$0xff]  ;;  %v1460_v3 = vpack.c.bf16 %v741_v0, %v733_v62 }
  0x4c   : > { %1433 = vmatprep.subr.bf16.mxu1 %v1432_v5  ;;  %v738_v2 = vld [vmem:[%s2380_s3 + $0x140] sm:$0xff]  ;;  %v732_v5 = vld [vmem:[%s2380_s3 + $0x110] sm:$0xff] }
  0x4d   : > { %v1446_v4 = vpack.c.bf16 %v738_v2, %v730_v1  ;;  %v742_v0 = vld [vmem:[%s2380_s3 + $0x160] sm:$0xff] }
  0x4e   : > { %1403 = vmatpush3.bf16.msra.mxu0 %v1402_v8  ;;  %v1462_v8 = vpack.c.bf16 %v740_v6, %v732_v5  ;;  %v751_v5 = vld [vmem:[%s2380_s3 + $0x1a8] sm:$0xff] }
  0x4f   : > { %1435 = vmatpush3.bf16.msra.mxu1 %v1434_v9  ;;  %1303 = vmatprep.subr.mxu0 %v1609_v13  ;;  %v755_v9 = vld [vmem:[%s2380_s3 + $0x1c8] sm:$0xff] }
  0x50   : > { %1437 = vmatprep.subr.bf16.mxu1 %v1436_v37  ;;  %v759_v6 = vld [vmem:[%s2380_s3 + $0x1e8] sm:$0xff] }
  0x51   : > { %537 = vmatmul.mubr.f32.vlgmr.msra.gmra.mrb[2].mxu0 %v2106_v10 }
  0x52   : > { %607 = vmatmul.mubr.f32.vlgmr.msra.gmra.mrb[2].mxu1 %v2109_v11  ;;  %1305 = vmatprep.mubr.msk.f32.mxu0 %vm1610_vm1, %v1609_v13 }
  0x53   : > { %1304 = vmatpush3.msk.msra.mxu0 %vm618_vm0, %v613_v12  ;;  %830 = vmatprep.mubr.f32.mxu1 %v1609_v13  ;;  %v749_v12 = vld [vmem:[%s2380_s3 + $0x198] sm:$0xff] }
  0x54   : > { %1453 = vmatprep.subr.bf16.mxu0 %v1452_v41  ;;  %1439 = vmatpush1.bf16.msra.mxu1 %v1438_v42  ;;  %v712_v41 = vld [vmem:[%s2380_s3 + $0x70] sm:$0xff]  ;;  %v719_v42 = vld [vmem:[%s2380_s3 + $0xa8] sm:$0xff] }
  0x55   : > { %1441 = vmatprep.subr.bf16.mxu1 %v1440_v51  ;;  %v1486_v47 = vpack.c.bf16 %v712_v41, %v704_v40  ;;  %v726_v51 = vld [vmem:[%s2380_s3 + $0xe0] sm:$0xff]  ;;  %v1472_v52 = vpack.c.bf16 %v727_v43, %v719_v42 }
  0x56   : > { %v1474_v61 = vpack.c.bf16 %v726_v51, %v718_v50 }
  0x58   : > { %1443 = vmatpush1.bf16.msra.mxu1 %v1442_v56  ;;  %v735_v56 = vld [vmem:[%s2380_s3 + $0x128] sm:$0xff] }
  0x59   : > { %1445 = vmatprep.subr.bf16.mxu1 %v1444_v63  ;;  %v734_v63 = vld [vmem:[%s2380_s3 + $0x120] sm:$0xff]  ;;  %v1476_v1 = vpack.c.bf16 %v743_v58, %v735_v56 }
  0x5c   : > { %1447 = vmatpush1.bf16.msra.mxu1 %v1446_v4  ;;  %v744_v4 = vld [vmem:[%s2380_s3 + $0x170] sm:$0xff] }
 0x104   : > { %v1193_v14 = vpop.f32.mrb[0].mxu0 }
 0x105   : > { %v1228_v15 = vpop.f32.mrb[0].mxu1  ;;  %v1194_v18 = vpop.f32.mrb[1].mxu0 }
 0x106   : > { %v1195_v19 = vadd.f32 %v1194_v18, %v1193_v14  ;;  %v1229_v20 = vpop.f32.mrb[1].mxu1  ;;  %v757_v14 = vld [vmem:[%s2380_s3 + $0x1d8] sm:$0xff] }
 0x107   : > { %v1230_v21 = vadd.f32 %v1229_v20, %v1228_v15  ;;  %v1448_v15 = vpack.c.bf16 %v755_v9, %v747_v7  ;;  %v1464_v18 = vpack.c.bf16 %v757_v14, %v749_v12  ;;  %v754_v20 = vld [vmem:[%s2380_s3 + $0x1c0] sm:$0xff]  ;;  %v753_v7 = vld [vmem:[%s2380_s3 + $0x1b8] sm:$0xff]  ;;  %v1478_v9 = vpack.c.bf16 %v742_v0, %v734_v63 }
 0x108   : > { %v750_v14 = vld [vmem:[%s2380_s3 + $0x1a0] sm:$0xff] }
 0x109   : > { %v469_v22 = vadd.f32 %v1230_v21, %v1195_v19  ;;  %v746_v19 = vld [vmem:[%s2380_s3 + $0x180] sm:$0xff]  ;;  %v748_v21 = vld [vmem:[%s2380_s3 + $0x190] sm:$0xff]  ;;  %1449 = vmatprep.subr.bf16.mxu1 %v1448_v15  ;;  %v1480_v15 = vpack.c.bf16 %v759_v6, %v751_v5 }
 0x124   : > { %v1263_v23 = vpop.f32.mrb[2].mxu0 }
 0x125   : > { %v1264_v24 = vpop.f32.mrb[3].mxu0  ;;  %v1298_v27 = vpop.f32.mrb[2].mxu1 }
 0x126   : > { %v1265_v28 = vadd.f32 %v1264_v24, %v1263_v23  ;;  %v1299_v29 = vpop.f32.mrb[3].mxu1  ;;  %v756_v23 = vld [vmem:[%s2380_s3 + $0x1d0] sm:$0xff]  ;;  %v703_v24 = vld [vmem:[%s2380_s3 + $0x28] sm:$0xff] }
 0x127   : > { %v1300_v30 = vadd.f32 %v1299_v29, %v1298_v27  ;;  %v711_v27 = vld [vmem:[%s2380_s3 + $0x68] sm:$0xff] }
 0x128   : > { %v539_v31 = vadd.f32 %v1265_v28, %v469_v22  ;;  %v1450_v22 = vpack.c.bf16 %v754_v20, %v746_v19  ;;  %v1466_v28 = vpack.c.bf16 %v756_v23, %v748_v21  ;;  %v1468_v29 = vpack.c.bf16 %v711_v27, %v703_v24  ;;  %v758_v19 = vld [vmem:[%s2380_s3 + $0x1e0] sm:$0xff]  ;;  %v760_v20 = vld [vmem:[%s2380_s3 + $0x1f0] sm:$0xff] }
 0x129   : > { %v1482_v21 = vpack.c.bf16 %v758_v19, %v750_v14 }
 0x12a   : > { %v609_v32 = vadd.f32 %v1300_v30, %v539_v31  ;;  %v705_v30 = vld [vmem:[%s2380_s3 + $0x38] sm:$0xff]  ;;  %1451 = vmatpush1.bf16.msra.mxu1 %v1450_v22 }
 0x12b   : > { %v713_v31 = vld [vmem:[%s2380_s3 + $0x78] sm:$0xff]  ;;  %1469 = vmatprep.subr.bf16.mxu1 %v1468_v29 }
 0x12c   : > { %v612_v33 = vmax.f32 %v609_v32, 0.0  ;;  %v1484_v32 = vpack.c.bf16 %v713_v31, %v705_v30 }
 0x12e   : > { %1306 = vmatmul.mubr.msk.f32.vlgmr.msra.gmra.mrb[4].mxu0 %vm614_vm2, %v612_v33 }
 0x12f   : > { %901 = vmatprep.mubr.f32.mxu0 %v1609_v13  ;;  %1455 = vmatpush1.bf16.msra.mxu0 %v1454_v45  ;;  %v729_v45 = vld [vmem:[%s2380_s3 + $0xf8] sm:$0xff] }
 0x130   : > { %1457 = vmatprep.subr.bf16.mxu0 %v1456_v55  ;;  %v1488_v53 = vpack.c.bf16 %v729_v45, %v721_v44  ;;  %v728_v55 = vld [vmem:[%s2380_s3 + $0xf0] sm:$0xff] }
 0x131   : > { %v1490_v62 = vpack.c.bf16 %v728_v55, %v720_v54 }
 0x133   : > { %1459 = vmatpush1.bf16.msra.mxu0 %v1458_v59  ;;  %v737_v59 = vld [vmem:[%s2380_s3 + $0x138] sm:$0xff] }
 0x134   : > { %1461 = vmatprep.subr.bf16.mxu0 %v1460_v3  ;;  %v1492_v2 = vpack.c.bf16 %v745_v60, %v737_v59  ;;  %v736_v3 = vld [vmem:[%s2380_s3 + $0x130] sm:$0xff] }
 0x135   : > { %v1494_v12 = vpack.c.bf16 %v744_v4, %v736_v3 }
 0x137   : > { %1463 = vmatpush1.bf16.msra.mxu0 %v1462_v8  ;;  %v761_v8 = vld [vmem:[%s2380_s3 + $0x1f8] sm:$0xff] }
 0x138   : > { %1465 = vmatprep.subr.bf16.mxu0 %v1464_v18  ;;  %v1496_v18 = vpack.c.bf16 %v761_v8, %v753_v7 }
 0x13b   : > { %1467 = vmatpush1.bf16.msra.mxu0 %v1466_v28 }
 0x13c   : > { %1485 = vmatprep.subr.bf16.mxu0 %v1484_v32 }
 0x201   : > { %v688_v33 = vpop.f32.mrb[4].mxu0 }
 0x202   : > { %v1149_v34 = vmul.f32 -1.442695, %v688_v33  ;;  %v1307_v35 = vpop.f32.mrb[5].mxu0 }
 0x204   : > { %1541 = vpow2.f32 %v1149_v34 }
 0x20e   : > { %v1542_v36 = vpop.eup %1541 }
 0x20f   : > { %v695_v37 = vadd.f32 1.0, %v1542_v36 }
 0x211   : > { %1543 = vrcp.f32 %v695_v37 }
 0x21b   : > { %v1544_v57 = vpop.eup %1543 }
 0x21c   : > { %1150 = vmatmul.mubr.msk.f32.vlgmr.msra.gmra.mrb[4].mxu1 %vm762_vm3, %v1544_v57  ;;  %1151 = vmatmul.mubr.msk.f32.vlgmr.msra.gmra.mrb[6].mxu0 %vm762_vm3, %v1544_v57 }
 0x21d   : > { %1471 = vmatpush1.bf16.msra.mxu1 %v1470_v46  ;;  %1487 = vmatpush1.bf16.msra.mxu0 %v1486_v47 }
 0x21e   : > { %1473 = vmatprep.subr.bf16.mxu1 %v1472_v52  ;;  %1489 = vmatprep.subr.bf16.mxu0 %v1488_v53 }
 0x21f   : > { %972 = vmatprep.mubr.f32.mxu1 %v1609_v13  ;;  %1043 = vmatprep.mubr.f32.mxu0 %v1609_v13  ;;  %v752_v13 = vld [vmem:[%s2380_s3 + $0x1b0] sm:$0xff] }
 0x220   : > { %v1498_v22 = vpack.c.bf16 %v760_v20, %v752_v13 }
 0x221   : > { %1475 = vmatpush1.bf16.msra.mxu1 %v1474_v61  ;;  %1491 = vmatpush1.bf16.msra.mxu0 %v1490_v62 }
 0x222   : > { %1477 = vmatprep.subr.bf16.mxu1 %v1476_v1  ;;  %1493 = vmatprep.subr.bf16.mxu0 %v1492_v2 }
 0x225   : > { %1479 = vmatpush1.bf16.msra.mxu1 %v1478_v9  ;;  %1495 = vmatpush1.bf16.msra.mxu0 %v1494_v12 }
 0x226   : > { %1481 = vmatprep.subr.bf16.mxu1 %v1480_v15  ;;  %1497 = vmatprep.subr.bf16.mxu0 %v1496_v18 }
 0x229   : > { %1483 = vmatpush1.bf16.msra.mxu1 %v1482_v21  ;;  %1499 = vmatpush1.bf16.msra.mxu0 %v1498_v22 }
 0x22c   : > { %1152 = vmatmul.mubr.msk.f32.vlgmr.msra.gmra.mrb[6].mxu1 %vm762_vm3, %v1544_v57  ;;  %1153 = vmatmul.mubr.msk.f32.vlgmr.msra.gmra.mrb[8].mxu0 %vm762_vm3, %v1544_v57 }
 0x2ef   : > { %v832_v23 = vpop.f32.mrb[4].mxu1  ;;  %v903_v24 = vpop.f32.mrb[6].mxu0 }
 0x2f0   : > { %v1050_v27 = vmul.f32 %v832_v23, %v1934_v48  ;;  %v1052_v28 = vmul.f32 %v903_v24, %v1937_v49  ;;  %v834_v29 = vpop.f32.mrb[5].mxu1  ;;  %v905_v30 = vpop.f32.mrb[7].mxu0 }
 0x2f1   : > { %v1051_v31 = vmul.f32 %v834_v29, %v1863_v16  ;;  %v1053_v32 = vmul.f32 %v905_v30, %v1866_v17 }
 0x2f2   : > { %1058 = vst [vmem:[%s190_s6] sm:$0xff] %v1050_v27  ;;  %1060 = vst [vmem:[%s190_s6 + $0x10] sm:$0xff] %v1052_v28 }
 0x2f3   : > { %1059 = vst [vmem:[%s190_s6 + $0x8] sm:$0xff] %v1051_v31  ;;  %1061 = vst [vmem:[%s190_s6 + $0x18] sm:$0xff] %v1053_v32 }
 0x2ff   : > { %v974_v33 = vpop.f32.mrb[6].mxu1  ;;  %v1045_v34 = vpop.f32.mrb[8].mxu0 }
 0x300   : > { %v1054_v48 = vmul.f32 %v974_v33, %v2106_v10  ;;  %v1056_v49 = vmul.f32 %v1045_v34, %v2109_v11  ;;  %v976_v35 = vpop.f32.mrb[7].mxu1  ;;  %v1047_v36 = vpop.f32.mrb[9].mxu0 }
 0x301   : > { %v1055_v16 = vmul.f32 %v976_v35, %v2014_v25  ;;  %v1057_v17 = vmul.f32 %v1047_v36, %v2017_v26 }
 0x302   : > { %1062 = vst [vmem:[%s190_s6 + $0x20] sm:$0xff] %v1054_v48  ;;  %1064 = vst [vmem:[%s190_s6 + $0x30] sm:$0xff] %v1056_v49 }
 0x303   : > { %1063 = vst [vmem:[%s190_s6 + $0x28] sm:$0xff] %v1055_v16  ;;  %1065 = vst [vmem:[%s190_s6 + $0x38] sm:$0xff] %v1057_v17 }
 0x304   : > { %1558 = shalt.err (!%p1555_p3)
}
 0x305   : > { %s1559_s7 = scalar_lea.hbm %s2333_s23, 1024  ;;  %s1563_s10 = scalar_lea.hbm %s2381_s4, 2048 }
 0x306   : > { %p1560_p4 = scmp.ne.s32.totalorder %s2333_s23, %s1559_s7  ;;  %p1564_p9 = scmp.lt.u32.totalorder %s2333_s23, %s2381_s4 }
 0x307   : > { %p1565_p10 = scmp.lt.u32.totalorder %s1563_s10, %s1559_s7  ;;  %p1567_p12 = scmp.lt.u32.totalorder %s1559_s7, %s2333_s23 }
 0x308   : > { %p1561_p7 = pnand %p1560_p4, %p1675_p5 }
 0x309   : > { %p1566_p11 = por %p1565_p10, %p1564_p9 }
 0x30a   : > { %p1562_p8 = pneg %p1561_p7 }
 0x30b   : > { %p1568_p13 = por %p1567_p12, %p1566_p11 }
 0x30d   : > { %p1569_p0 = pnand %p1568_p13, %p1562_p8 }
 0x30f   : > { %1572 = shalt.err (!%p1569_p0)
}
 0x310   : > { %1500 = dma.vmem_to_hbm [thread:$0]  (%p1675_p5), %s2335_s14, 1024, %s2333_s23, %s1067_s19  }
 0x311 PF: > { %p1506_p1 = scmp.ge.s32.totalorder %s1607_s18, 2  ;;  %s1093_s5 = sand.u32 1, %s1595_s15  }
 0x312   : > { %s1094_s6 = scalar_lea.sflag [#allocation3], %s1093_s5 }
 0x313   : > { %p1503_p2 = pnand %p1506_p1, %p1679_p6 }
 0x315   : > { %1590 = dma.done.wait (!%p1503_p2), %s1094_s6, 1024  }
 0x316   : > { %1592 = vsyncadd (!%p1503_p2), %s1094_s6, 4294966272  ;;  %p14_p3 = scmp.ge.s32.totalorder %s1662_s21, 4   ;;  %s2384_s15 = smov %s1599_s16 }
 0x317   : > { %s2385_s16 = smov %s1603_s17  ;;  %s2386_s17 = smov %s1673_s24 }
 0x318   : > { %s2387_s18 = smov %s1662_s21  ;;  %16 = sbr.rel (!%p14_p3) target bundleno = 3 (0x3), region = 71 }
 0x31f   :  { %1099 = vsyncpa [#allocation3], 1 }
 0x320   :  { %1101 = vsyncpa [#allocation3 + $0x1], 1 }

// kernel: tpu_custom_call.1
= control target key start
LH: loop header
LB: loop body
LE: loop exit
PB: predicated region body
PF: predicated region fallthrough
CT: control target
= control target key end

     0   :  { %9 = vsyncpa [#allocation3], 0  ;;  %s2377_s0 = inlined_call_operand.vmem [shape: f32[16,1024], index: 0, kind: input, shape index: {}]   ;;  %s2378_s1 = inlined_call_operand.vmem [shape: f32[1024,4], index: 1, kind: input, shape index: {}]   ;;  %s2379_s2 = inlined_call_operand.vmem [shape: f32[4,64], index: 2, kind: input, shape index: {}]   ;;  %s2380_s3 = inlined_call_operand.vmem [shape: f32[64,1024], index: 3, kind: input, shape index: {}]   ;;  %s2381_s4 = inlined_call_operand.hbm [shape: f32[16,1024], index: 4, kind: output, shape index: {}]  }
   0x1   :  { %11 = vsyncpa [#allocation3 + $0x1], 0  ;;  %s1637_s15 = smov 0   ;;  %s1639_s16 = smov 0  }
   0x2   :  { %s1641_s17 = smov 0   ;;  %s1643_s18 = smov 0  }
   0x3 LB: > { %s1658_s19 = sadd.s32 4294967295, %s1607_s18   ;;  %s1140_s20 = sadd.s32 4294967294, %s1607_s18   ;;  %s1607_s18 = sphi %s1643_s18, %s2387_s18   ;;  %s1603_s17 = sphi %s1641_s17, %s2386_s17   ;;  %s1599_s16 = sphi %s1639_s16, %s2385_s16   ;;  %s1595_s15 = sphi %s1637_s15, %s2384_s15  }
   0x4   : > { %s1662_s21 = sadd.s32 1, %s1607_s18   ;;  %s113_s22 = sadd.s32 1, %s1603_s17 }
   0x5   : > { %s110_s23 = ssub.s32 %s1607_s18, %s1662_s21  ;;  %p123_p0 = scmp.ne.s32.totalorder %s1603_s17, %s1599_s16 }
   0x6   : > { %p111_p1 = scmp.eq.s32.totalorder %s110_s23, 0  ;;  %p124_p2 = scmp.eq.s32.totalorder %s1658_s19, 1 }
   0x7   : > { %p129_p3 = scmp.ne.s32.totalorder %s1599_s16, %s1595_s15  ;;  %p130_p4 = scmp.eq.s32.totalorder %s1140_s20, 1 }
   0x8   : > { %s1673_s24 = scalar_select %p111_p1, %s1603_s17, %s113_s22  }
   0x9   : > { %p1675_p5 = por %p124_p2, %p123_p0  ;;  %p1679_p6 = por %p130_p4, %p129_p3 }
   0xa   : > { %p1143_p7 = scmp.ge.s32.totalorder %s1607_s18, 1  ;;  %p165_p8 = scmp.lt.s32.totalorder %s1607_s18, 3 }
   0xc   : > { %p166_p9 = pnand %p1143_p7, %p165_p8 }
   0xd   : > { %v220_v0 = vld [vmem:[%s2378_s1 + $0x80] sm:$0xff] (!%p166_p9)  ;;  %v221_v1 = vld [vmem:[%s2378_s1 + $0x88] sm:$0xff] (!%p166_p9)  ;;  %v222_v11 = vld [vmem:[%s2378_s1 + $0x90] sm:$0xff] (!%p166_p9)  ;;  %p191_p10 = scmp.lt.s32.totalorder (!%p166_p9), %s1658_s19, 1  ;;  %vm618_vm0 = vcmask (!%p166_p9), 1043456   ;;  %vm1610_vm1 = vmmov (!%p166_p9), 0  }
   0xe   : > { %169 = sbr.rel (%p166_p9) target bundleno = 785 (0x311), region = 36  ;;  %v252_v2 = vld [vmem:[%s2378_s1 + $0x180] sm:$0xff] (!%p166_p9)  ;;  %v1308_v3 = vpack.c.bf16 (!%p166_p9), %v221_v1, %v220_v0  ;;  %v253_v4 = vld [vmem:[%s2378_s1 + $0x188] sm:$0xff] (!%p166_p9)  ;;  %v223_v13 = vld [vmem:[%s2378_s1 + $0x98] sm:$0xff] (!%p166_p9)  ;;  %vm614_vm2 = vcmask (!%p166_p9), 31744   ;;  %vm762_vm3 = vcmask (!%p166_p9), 523264  }
   0xf   : > { %v204_v5 = vld [vmem:[%s2378_s1] sm:$0xff] (!%p166_p9)  ;;  %v205_v6 = vld [vmem:[%s2378_s1 + $0x8] sm:$0xff] (!%p166_p9)  ;;  %v1340_v7 = vpack.c.bf16 (!%p166_p9), %v253_v4, %v252_v2  ;;  %v254_v14 = vld [vmem:[%s2378_s1 + $0x190] sm:$0xff] (!%p166_p9)  ;;  %v1312_v16 = vpack.c.bf16 (!%p166_p9), %v223_v13, %v222_v11  ;;  %s188_s12 = sand.u32 (!%p166_p9), 1, %s1599_s16   ;;  %s1160_s13 = sshll.u32 (!%p166_p9), %s1658_s19, 10 }
  0x10   : > { %v1310_v8 = vpack.c.bf16 (!%p166_p9), %v205_v6, %v204_v5  ;;  %v236_v9 = vld [vmem:[%s2378_s1 + $0x100] sm:$0xff] (!%p166_p9)  ;;  %v237_v10 = vld [vmem:[%s2378_s1 + $0x108] sm:$0xff] (!%p166_p9)  ;;  %1309 = vmatprep.subr.bf16.mxu0 (!%p166_p9), %v1308_v3  ;;  %v255_v15 = vld [vmem:[%s2378_s1 + $0x198] sm:$0xff] (!%p166_p9)  ;;  %s2333_s23 = scalar_lea.hbm (!%p166_p9), %s2381_s4, %s1160_s13  ;;  %s1611_s27 = smov (!%p166_p9), [#allocation2]  }
  0x11   : > { %v1342_v12 = vpack.c.bf16 (!%p166_p9), %v237_v10, %v236_v9  ;;  %1341 = vmatprep.subr.bf16.mxu1 (!%p166_p9), %v1340_v7  ;;  %v1344_v17 = vpack.c.bf16 (!%p166_p9), %v255_v15, %v254_v14  ;;  %v206_v18 = vld [vmem:[%s2378_s1 + $0x10] sm:$0xff] (!%p166_p9)  ;;  %v207_v19 = vld [vmem:[%s2378_s1 + $0x18] sm:$0xff] (!%p166_p9)  ;;  %v224_v23 = vld [vmem:[%s2378_s1 + $0xa0] sm:$0xff] (!%p166_p9)  ;;  %s1549_s28 = sshll.u32 (!%p166_p9), %s1611_s27, 4  ;;  %s1550_s28 = int_to_ptr.vmem [resolvable:$false] %s1549_s28 }
  0x12   : > { %1311 = vmatpush3.bf16.msra.mxu0 (!%p166_p9), %v1310_v8  ;;  %v238_v20 = vld [vmem:[%s2378_s1 + $0x110] sm:$0xff] (!%p166_p9)  ;;  %v1314_v21 = vpack.c.bf16 (!%p166_p9), %v207_v19, %v206_v18  ;;  %v239_v22 = vld [vmem:[%s2378_s1 + $0x118] sm:$0xff] (!%p166_p9)  ;;  %v225_v24 = vld [vmem:[%s2378_s1 + $0xa8] sm:$0xff] (!%p166_p9)  ;;  %s1551_s30 = scalar_lea.vmem (!%p166_p9), %s1550_s28, 2048 }
  0x13   : > { %1343 = vmatpush3.bf16.msra.mxu1 (!%p166_p9), %v1342_v12  ;;  %1313 = vmatprep.subr.bf16.mxu0 (!%p166_p9), %v1312_v16  ;;  %v1346_v25 = vpack.c.bf16 (!%p166_p9), %v239_v22, %v238_v20  ;;  %v1316_v26 = vpack.c.bf16 (!%p166_p9), %v225_v24, %v224_v23  ;;  %v256_v27 = vld [vmem:[%s2378_s1 + $0x1a0] sm:$0xff] (!%p166_p9)  ;;  %v257_v28 = vld [vmem:[%s2378_s1 + $0x1a8] sm:$0xff] (!%p166_p9)  ;;  %v226_v35 = vld [vmem:[%s2378_s1 + $0xb0] sm:$0xff] (!%p166_p9) }
  0x14   : > { %1345 = vmatprep.subr.bf16.mxu1 (!%p166_p9), %v1344_v17  ;;  %v208_v29 = vld [vmem:[%s2378_s1 + $0x20] sm:$0xff] (!%p166_p9)  ;;  %v1348_v30 = vpack.c.bf16 (!%p166_p9), %v257_v28, %v256_v27  ;;  %v209_v31 = vld [vmem:[%s2378_s1 + $0x28] sm:$0xff] (!%p166_p9)  ;;  %v227_v36 = vld [vmem:[%s2378_s1 + $0xb8] sm:$0xff] (!%p166_p9) }
  0x15   : > { %v240_v32 = vld [vmem:[%s2378_s1 + $0x120] sm:$0xff]  ;;  %v241_v33 = vld [vmem:[%s2378_s1 + $0x128] sm:$0xff]  ;;  %v1318_v34 = vpack.c.bf16 %v209_v31, %v208_v29  ;;  %v258_v37 = vld [vmem:[%s2378_s1 + $0x1b0] sm:$0xff]  ;;  %v1320_v39 = vpack.c.bf16 %v227_v36, %v226_v35  ;;  %s1797_s5 = scalar_select %p191_p10, %s1658_s19, 1 }
  0x16   : > { %1315 = vmatpush3.bf16.msra.mxu0 %v1314_v21  ;;  %v1350_v38 = vpack.c.bf16 %v241_v33, %v240_v32  ;;  %v259_v40 = vld [vmem:[%s2378_s1 + $0x1b8] sm:$0xff]  ;;  %v210_v41 = vld [vmem:[%s2378_s1 + $0x30] sm:$0xff]  ;;  %v228_v46 = vld [vmem:[%s2378_s1 + $0xc0] sm:$0xff]  ;;  %s1067_s19 = scalar_lea.sflag [#allocation3], %s188_s12 }
  0x17   : > { %1347 = vmatpush3.bf16.msra.mxu1 %v1346_v25  ;;  %1317 = vmatprep.subr.bf16.mxu0 %v1316_v26  ;;  %v211_v42 = vld [vmem:[%s2378_s1 + $0x38] sm:$0xff]  ;;  %v1352_v43 = vpack.c.bf16 %v259_v40, %v258_v37  ;;  %v242_v44 = vld [vmem:[%s2378_s1 + $0x130] sm:$0xff]  ;;  %v229_v47 = vld [vmem:[%s2378_s1 + $0xc8] sm:$0xff]  ;;  %s1159_s6 = sshll.u32 %s1797_s5, 6  ;;  %s1144_s5 = sshll.u32 %s188_s12, 6 }
  0x18   : > { %1349 = vmatprep.subr.bf16.mxu1 %v1348_v30  ;;  %v243_v45 = vld [vmem:[%s2378_s1 + $0x138] sm:$0xff]  ;;  %v260_v48 = vld [vmem:[%s2378_s1 + $0x1c0] sm:$0xff]  ;;  %v261_v49 = vld [vmem:[%s2378_s1 + $0x1c8] sm:$0xff]  ;;  %v1322_v50 = vpack.c.bf16 %v211_v42, %v210_v41  ;;  %v1324_v52 = vpack.c.bf16 %v229_v47, %v228_v46  ;;  %s1845_s29 = scalar_lea.vmem %s2377_s0, %s1159_s6  ;;  %s190_s6 = scalar_lea.vmem [#allocation2], %s1144_s5 }
  0x19   : > { %v1354_v51 = vpack.c.bf16 %v243_v45, %v242_v44  ;;  %v212_v53 = vld [vmem:[%s2378_s1 + $0x40] sm:$0xff]  ;;  %v213_v54 = vld [vmem:[%s2378_s1 + $0x48] sm:$0xff]  ;;  %v1356_v56 = vpack.c.bf16 %v261_v49, %v260_v48  ;;  %v230_v58 = vld [vmem:[%s2378_s1 + $0xd0] sm:$0xff]  ;;  %s1081_s14 = sshll.u32 %s190_s6, 4  ;;  %s2335_s14 = int_to_ptr.vmem [resolvable:$true] %s1081_s14 }
  0x1a   : > { %1319 = vmatpush3.bf16.msra.mxu0 %v1318_v34  ;;  %v244_v55 = vld [vmem:[%s2378_s1 + $0x140] sm:$0xff]  ;;  %v245_v57 = vld [vmem:[%s2378_s1 + $0x148] sm:$0xff]  ;;  %v231_v59 = vld [vmem:[%s2378_s1 + $0xd8] sm:$0xff]  ;;  %v1326_v62 = vpack.c.bf16 %v213_v54, %v212_v53  ;;  %p1552_p0 = scmp.lt.s32.totalorder %s2335_s14, %s1550_s28 }
  0x1b   : > { %1351 = vmatpush3.bf16.msra.mxu1 %v1350_v38  ;;  %1321 = vmatprep.subr.bf16.mxu0 %v1320_v39  ;;  %v262_v60 = vld [vmem:[%s2378_s1 + $0x1d0] sm:$0xff]  ;;  %v263_v61 = vld [vmem:[%s2378_s1 + $0x1d8] sm:$0xff]  ;;  %v1358_v63 = vpack.c.bf16 %v245_v57, %v244_v55  ;;  %v1328_v0 = vpack.c.bf16 %v231_v59, %v230_v58  ;;  %v232_v6 = vld [vmem:[%s2378_s1 + $0xe0] sm:$0xff] }
  0x1c   : > { %1353 = vmatprep.subr.bf16.mxu1 %v1352_v43  ;;  %v214_v1 = vld [vmem:[%s2378_s1 + $0x50] sm:$0xff]  ;;  %v215_v2 = vld [vmem:[%s2378_s1 + $0x58] sm:$0xff]  ;;  %v1360_v4 = vpack.c.bf16 %v263_v61, %v262_v60  ;;  %v233_v7 = vld [vmem:[%s2378_s1 + $0xe8] sm:$0xff] }
  0x1d   : > { %v246_v3 = vld [vmem:[%s2378_s1 + $0x150] sm:$0xff]  ;;  %v247_v5 = vld [vmem:[%s2378_s1 + $0x158] sm:$0xff]  ;;  %v264_v8 = vld [vmem:[%s2378_s1 + $0x1e0] sm:$0xff]  ;;  %v1330_v10 = vpack.c.bf16 %v215_v2, %v214_v1  ;;  %v1332_v14 = vpack.c.bf16 %v233_v7, %v232_v6 }
  0x1e   : > { %1323 = vmatpush3.bf16.msra.mxu0 %v1322_v50  ;;  %v265_v9 = vld [vmem:[%s2378_s1 + $0x1e8] sm:$0xff]  ;;  %v216_v11 = vld [vmem:[%s2378_s1 + $0x60] sm:$0xff]  ;;  %v1362_v13 = vpack.c.bf16 %v247_v5, %v246_v3  ;;  %v1866_v17 = vld [vmem:[%s1845_s29 + $0x18] sm:$0xff] }
  0x1f   : > { %1355 = vmatpush3.bf16.msra.mxu1 %v1354_v51  ;;  %1325 = vmatprep.subr.bf16.mxu0 %v1324_v52  ;;  %v217_v12 = vld [vmem:[%s2378_s1 + $0x68] sm:$0xff]  ;;  %v248_v15 = vld [vmem:[%s2378_s1 + $0x160] sm:$0xff]  ;;  %v1364_v18 = vpack.c.bf16 %v265_v9, %v264_v8  ;;  %v234_v20 = vld [vmem:[%s2378_s1 + $0xf0] sm:$0xff] }
  0x20   : > { %1357 = vmatprep.subr.bf16.mxu1 %v1356_v56  ;;  %v1863_v16 = vld [vmem:[%s1845_s29 + $0x8] sm:$0xff]  ;;  %v235_v21 = vld [vmem:[%s2378_s1 + $0xf8] sm:$0xff]  ;;  %v266_v22 = vld [vmem:[%s2378_s1 + $0x1f0] sm:$0xff]  ;;  %466 = vmatprep.mubr.f32.mxu1 %v1866_v17  ;;  %v1334_v24 = vpack.c.bf16 %v217_v12, %v216_v11 }
  0x21   : > { %v249_v19 = vld [vmem:[%s2378_s1 + $0x168] sm:$0xff]  ;;  %396 = vmatprep.mubr.f32.mxu0 %v1863_v16  ;;  %v267_v23 = vld [vmem:[%s2378_s1 + $0x1f8] sm:$0xff]  ;;  %v1336_v26 = vpack.c.bf16 %v235_v21, %v234_v20  ;;  %v218_v27 = vld [vmem:[%s2378_s1 + $0x70] sm:$0xff] }
  0x22   : > { %1327 = vmatpush3.bf16.msra.mxu0 %v1326_v62  ;;  %v1366_v25 = vpack.c.bf16 %v249_v19, %v248_v15  ;;  %v219_v28 = vld [vmem:[%s2378_s1 + $0x78] sm:$0xff]  ;;  %v250_v29 = vld [vmem:[%s2378_s1 + $0x170] sm:$0xff]  ;;  %v1368_v30 = vpack.c.bf16 %v267_v23, %v266_v22  ;;  %v284_v32 = vld [vmem:[%s2378_s1 + $0x280] sm:$0xff] }
  0x23   : > { %1359 = vmatpush3.bf16.msra.mxu1 %v1358_v63  ;;  %1329 = vmatprep.subr.bf16.mxu0 %v1328_v0  ;;  %v251_v31 = vld [vmem:[%s2378_s1 + $0x178] sm:$0xff]  ;;  %v285_v33 = vld [vmem:[%s2378_s1 + $0x288] sm:$0xff]  ;;  %v316_v34 = vld [vmem:[%s2378_s1 + $0x380] sm:$0xff]  ;;  %v1338_v36 = vpack.c.bf16 %v219_v28, %v218_v27 }
  0x24   : > { %1361 = vmatprep.subr.bf16.mxu1 %v1360_v4  ;;  %v317_v35 = vld [vmem:[%s2378_s1 + $0x388] sm:$0xff]  ;;  %v1370_v37 = vpack.c.bf16 %v251_v31, %v250_v29  ;;  %v1372_v38 = vpack.c.bf16 %v285_v33, %v284_v32  ;;  %v268_v39 = vld [vmem:[%s2378_s1 + $0x200] sm:$0xff]  ;;  %v286_v44 = vld [vmem:[%s2378_s1 + $0x290] sm:$0xff] }
  0x25   : > { %v269_v40 = vld [vmem:[%s2378_s1 + $0x208] sm:$0xff]  ;;  %v300_v41 = vld [vmem:[%s2378_s1 + $0x300] sm:$0xff]  ;;  %v1404_v42 = vpack.c.bf16 %v317_v35, %v316_v34  ;;  %v287_v45 = vld [vmem:[%s2378_s1 + $0x298] sm:$0xff] }
  0x26   : > { %1331 = vmatpush3.bf16.msra.mxu0 %v1330_v10  ;;  %v301_v43 = vld [vmem:[%s2378_s1 + $0x308] sm:$0xff]  ;;  %v318_v46 = vld [vmem:[%s2378_s1 + $0x390] sm:$0xff]  ;;  %v319_v47 = vld [vmem:[%s2378_s1 + $0x398] sm:$0xff]  ;;  %v1374_v50 = vpack.c.bf16 %v269_v40, %v268_v39  ;;  %v1376_v52 = vpack.c.bf16 %v287_v45, %v286_v44 }
  0x27   : > { %1363 = vmatpush3.bf16.msra.mxu1 %v1362_v13  ;;  %1333 = vmatprep.subr.bf16.mxu0 %v1332_v14  ;;  %v1934_v48 = vld [vmem:[%s1845_s29] sm:$0xff]  ;;  %v1937_v49 = vld [vmem:[%s1845_s29 + $0x10] sm:$0xff]  ;;  %v1406_v51 = vpack.c.bf16 %v301_v43, %v300_v41  ;;  %v271_v54 = vld [vmem:[%s2378_s1 + $0x218] sm:$0xff]  ;;  %v1408_v56 = vpack.c.bf16 %v319_v47, %v318_v46 }
  0x28   : > { %1365 = vmatprep.subr.bf16.mxu1 %v1364_v18  ;;  %v270_v53 = vld [vmem:[%s2378_s1 + $0x210] sm:$0xff]  ;;  %v303_v57 = vld [vmem:[%s2378_s1 + $0x318] sm:$0xff]  ;;  %v288_v58 = vld [vmem:[%s2378_s1 + $0x2a0] sm:$0xff] }
  0x29   : > { %v302_v55 = vld [vmem:[%s2378_s1 + $0x310] sm:$0xff]  ;;  %v289_v59 = vld [vmem:[%s2378_s1 + $0x2a8] sm:$0xff]  ;;  %v320_v60 = vld [vmem:[%s2378_s1 + $0x3a0] sm:$0xff]  ;;  %v1378_v62 = vpack.c.bf16 %v271_v54, %v270_v53 }
  0x2a   : > { %1335 = vmatpush3.bf16.msra.mxu0 %v1334_v24  ;;  %v321_v61 = vld [vmem:[%s2378_s1 + $0x3a8] sm:$0xff]  ;;  %v1410_v63 = vpack.c.bf16 %v303_v57, %v302_v55  ;;  %v1380_v0 = vpack.c.bf16 %v289_v59, %v288_v58  ;;  %v272_v1 = vld [vmem:[%s2378_s1 + $0x220] sm:$0xff]  ;;  %v290_v6 = vld [vmem:[%s2378_s1 + $0x2b0] sm:$0xff] }
  0x2b   : > { %1367 = vmatpush3.bf16.msra.mxu1 %v1366_v25  ;;  %1337 = vmatprep.subr.bf16.mxu0 %v1336_v26  ;;  %v273_v2 = vld [vmem:[%s2378_s1 + $0x228] sm:$0xff]  ;;  %v304_v3 = vld [vmem:[%s2378_s1 + $0x320] sm:$0xff]  ;;  %v1412_v4 = vpack.c.bf16 %v321_v61, %v320_v60  ;;  %v291_v7 = vld [vmem:[%s2378_s1 + $0x2b8] sm:$0xff] }
  0x2c   : > { %1369 = vmatprep.subr.bf16.mxu1 %v1368_v30  ;;  %v305_v5 = vld [vmem:[%s2378_s1 + $0x328] sm:$0xff]  ;;  %v322_v8 = vld [vmem:[%s2378_s1 + $0x3b0] sm:$0xff]  ;;  %v323_v9 = vld [vmem:[%s2378_s1 + $0x3b8] sm:$0xff]  ;;  %v1382_v10 = vpack.c.bf16 %v273_v2, %v272_v1  ;;  %v1384_v12 = vpack.c.bf16 %v291_v7, %v290_v6 }
  0x2d   : > { %v1414_v11 = vpack.c.bf16 %v305_v5, %v304_v3  ;;  %v274_v13 = vld [vmem:[%s2378_s1 + $0x230] sm:$0xff]  ;;  %v275_v14 = vld [vmem:[%s2378_s1 + $0x238] sm:$0xff]  ;;  %v1416_v18 = vpack.c.bf16 %v323_v9, %v322_v8  ;;  %v292_v20 = vld [vmem:[%s2378_s1 + $0x2c0] sm:$0xff] }
  0x2e   : > { %1339 = vmatpush3.bf16.msra.mxu0 %v1338_v36  ;;  %v306_v15 = vld [vmem:[%s2378_s1 + $0x330] sm:$0xff]  ;;  %v307_v19 = vld [vmem:[%s2378_s1 + $0x338] sm:$0xff]  ;;  %v293_v21 = vld [vmem:[%s2378_s1 + $0x2c8] sm:$0xff]  ;;  %v1386_v24 = vpack.c.bf16 %v275_v14, %v274_v13  ;;  %v1609_v13 = vmov 0.0  }
  0x2f   : > { %1371 = vmatpush3.bf16.msra.mxu1 %v1370_v37  ;;  %1373 = vmatprep.subr.bf16.mxu0 %v1372_v38  ;;  %v324_v22 = vld [vmem:[%s2378_s1 + $0x3c0] sm:$0xff]  ;;  %v325_v23 = vld [vmem:[%s2378_s1 + $0x3c8] sm:$0xff]  ;;  %v2017_v26 = vld [vmem:[%s1845_s29 + $0x38] sm:$0xff]  ;;  %v1418_v27 = vpack.c.bf16 %v307_v19, %v306_v15  ;;  %v1388_v28 = vpack.c.bf16 %v293_v21, %v292_v20 }
  0x30   : > { %1405 = vmatprep.subr.bf16.mxu1 %v1404_v42  ;;  %v2014_v25 = vld [vmem:[%s1845_s29 + $0x28] sm:$0xff]  ;;  %v276_v29 = vld [vmem:[%s2378_s1 + $0x240] sm:$0xff]  ;;  %v1420_v32 = vpack.c.bf16 %v325_v23, %v324_v22  ;;  %v294_v34 = vld [vmem:[%s2378_s1 + $0x2d0] sm:$0xff] }
  0x31   : > { %397 = vmatmul.mubr.f32.vlgmr.msra.gmra.mrb[0].mxu0 %v1934_v48  ;;  %v277_v30 = vld [vmem:[%s2378_s1 + $0x248] sm:$0xff]  ;;  %v308_v31 = vld [vmem:[%s2378_s1 + $0x340] sm:$0xff]  ;;  %v295_v35 = vld [vmem:[%s2378_s1 + $0x2d8] sm:$0xff] }
  0x32   : > { %467 = vmatmul.mubr.f32.vlgmr.msra.gmra.mrb[0].mxu1 %v1937_v49  ;;  %1375 = vmatpush3.bf16.msra.mxu0 %v1374_v50  ;;  %v309_v33 = vld [vmem:[%s2378_s1 + $0x348] sm:$0xff]  ;;  %v326_v36 = vld [vmem:[%s2378_s1 + $0x3d0] sm:$0xff]  ;;  %v327_v37 = vld [vmem:[%s2378_s1 + $0x3d8] sm:$0xff]  ;;  %v1390_v38 = vpack.c.bf16 %v277_v30, %v276_v29  ;;  %v1392_v40 = vpack.c.bf16 %v295_v35, %v294_v34 }
  0x33   : > { %1407 = vmatpush3.bf16.msra.mxu1 %v1406_v51  ;;  %1377 = vmatprep.subr.bf16.mxu0 %v1376_v52  ;;  %v1422_v39 = vpack.c.bf16 %v309_v33, %v308_v31  ;;  %v278_v41 = vld [vmem:[%s2378_s1 + $0x250] sm:$0xff]  ;;  %v279_v42 = vld [vmem:[%s2378_s1 + $0x258] sm:$0xff]  ;;  %v1424_v44 = vpack.c.bf16 %v327_v37, %v326_v36  ;;  %v296_v46 = vld [vmem:[%s2378_s1 + $0x2e0] sm:$0xff] }
  0x34   : > { %1409 = vmatprep.subr.bf16.mxu1 %v1408_v56  ;;  %536 = vmatprep.mubr.f32.mxu0 %v2014_v25  ;;  %v310_v43 = vld [vmem:[%s2378_s1 + $0x350] sm:$0xff]  ;;  %v311_v45 = vld [vmem:[%s2378_s1 + $0x358] sm:$0xff]  ;;  %v297_v47 = vld [vmem:[%s2378_s1 + $0x2e8] sm:$0xff]  ;;  %v1394_v52 = vpack.c.bf16 %v279_v42, %v278_v41 }
  0x35   : > { %606 = vmatprep.mubr.f32.mxu1 %v2017_v26  ;;  %v328_v50 = vld [vmem:[%s2378_s1 + $0x3e0] sm:$0xff]  ;;  %v329_v51 = vld [vmem:[%s2378_s1 + $0x3e8] sm:$0xff]  ;;  %v1426_v53 = vpack.c.bf16 %v311_v45, %v310_v43  ;;  %v1396_v54 = vpack.c.bf16 %v297_v47, %v296_v46  ;;  %v298_v60 = vld [vmem:[%s2378_s1 + $0x2f0] sm:$0xff] }
  0x36   : > { %1379 = vmatpush3.bf16.msra.mxu0 %v1378_v62  ;;  %v280_v55 = vld [vmem:[%s2378_s1 + $0x260] sm:$0xff]  ;;  %v281_v56 = vld [vmem:[%s2378_s1 + $0x268] sm:$0xff]  ;;  %v1428_v58 = vpack.c.bf16 %v329_v51, %v328_v50  ;;  %v299_v61 = vld [vmem:[%s2378_s1 + $0x2f8] sm:$0xff] }
  0x37   : > { %1411 = vmatpush3.bf16.msra.mxu1 %v1410_v63  ;;  %1381 = vmatprep.subr.bf16.mxu0 %v1380_v0  ;;  %v312_v57 = vld [vmem:[%s2378_s1 + $0x360] sm:$0xff]  ;;  %v313_v59 = vld [vmem:[%s2378_s1 + $0x368] sm:$0xff]  ;;  %v330_v62 = vld [vmem:[%s2378_s1 + $0x3f0] sm:$0xff]  ;;  %v1398_v0 = vpack.c.bf16 %v281_v56, %v280_v55  ;;  %v1400_v2 = vpack.c.bf16 %v299_v61, %v298_v60 }
  0x38   : > { %1413 = vmatprep.subr.bf16.mxu1 %v1412_v4  ;;  %v331_v63 = vld [vmem:[%s2378_s1 + $0x3f8] sm:$0xff]  ;;  %v1430_v1 = vpack.c.bf16 %v313_v59, %v312_v57  ;;  %v282_v3 = vld [vmem:[%s2378_s1 + $0x270] sm:$0xff]  ;;  %v699_v34 = vld [vmem:[%s2380_s3 + $0x8] sm:$0xff] }
  0x39   : > { %v283_v4 = vld [vmem:[%s2378_s1 + $0x278] sm:$0xff]  ;;  %v1432_v5 = vpack.c.bf16 %v331_v63, %v330_v62  ;;  %v314_v6 = vld [vmem:[%s2378_s1 + $0x370] sm:$0xff]  ;;  %v707_v35 = vld [vmem:[%s2380_s3 + $0x48] sm:$0xff] }
  0x3a   : > { %1383 = vmatpush3.bf16.msra.mxu0 %v1382_v10  ;;  %v315_v7 = vld [vmem:[%s2378_s1 + $0x378] sm:$0xff]  ;;  %v1402_v8 = vpack.c.bf16 %v283_v4, %v282_v3  ;;  %v2106_v10 = vld [vmem:[%s1845_s29 + $0x20] sm:$0xff]  ;;  %v1436_v37 = vpack.c.bf16 %v707_v35, %v699_v34  ;;  %v700_v43 = vld [vmem:[%s2380_s3 + $0x10] sm:$0xff] }
  0x3b   : > { %1415 = vmatpush3.bf16.msra.mxu1 %v1414_v11  ;;  %1385 = vmatprep.subr.bf16.mxu0 %v1384_v12  ;;  %v1434_v9 = vpack.c.bf16 %v315_v7, %v314_v6  ;;  %v2109_v11 = vld [vmem:[%s1845_s29 + $0x30] sm:$0xff]  ;;  %v613_v12 = vld [vmem:[%s2379_s2] sm:$0xf]  ;;  %v701_v36 = vld [vmem:[%s2380_s3 + $0x18] sm:$0xff]  ;;  %s1545_s29 = scalar_lea.vmem %s2335_s14, 1024 }
  0x3c   : > { %1417 = vmatprep.subr.bf16.mxu1 %v1416_v18  ;;  %v715_v46 = vld [vmem:[%s2380_s3 + $0x88] sm:$0xff]  ;;  %v717_v50 = vld [vmem:[%s2380_s3 + $0x98] sm:$0xff]  ;;  %v716_v57 = vld [vmem:[%s2380_s3 + $0x90] sm:$0xff]  ;;  %p1546_p11 = scmp.ne.s32.totalorder %s2335_s14, %s1545_s29  ;;  %p1553_p1 = scmp.lt.s32.totalorder %s1551_s30, %s1545_s29 }
  0x3d   : > { %v723_v47 = vld [vmem:[%s2380_s3 + $0xc8] sm:$0xff]  ;;  %v733_v62 = vld [vmem:[%s2380_s3 + $0x118] sm:$0xff]  ;;  %v740_v6 = vld [vmem:[%s2380_s3 + $0x150] sm:$0xff] }
  0x3e   : > { %1387 = vmatpush3.bf16.msra.mxu0 %v1386_v24  ;;  %v1440_v51 = vpack.c.bf16 %v723_v47, %v715_v46  ;;  %v731_v60 = vld [vmem:[%s2380_s3 + $0x108] sm:$0xff]  ;;  %p1547_p12 = pnand %p1546_p11, %p1675_p5  ;;  %p1554_p2 = por %p1553_p1, %p1552_p0 }
  0x3f   : > { %1419 = vmatpush3.bf16.msra.mxu1 %v1418_v27  ;;  %1389 = vmatprep.subr.bf16.mxu0 %v1388_v28  ;;  %v739_v61 = vld [vmem:[%s2380_s3 + $0x148] sm:$0xff] }
  0x40   : > { %1421 = vmatprep.subr.bf16.mxu1 %v1420_v32  ;;  %v1444_v63 = vpack.c.bf16 %v739_v61, %v731_v60  ;;  %v747_v7 = vld [vmem:[%s2380_s3 + $0x188] sm:$0xff]  ;;  %v745_v60 = vld [vmem:[%s2380_s3 + $0x178] sm:$0xff]  ;;  %p1548_p13 = pneg %p1547_p12 }
  0x42   : > { %1391 = vmatpush3.bf16.msra.mxu0 %v1390_v38  ;;  %v709_v38 = vld [vmem:[%s2380_s3 + $0x58] sm:$0xff]  ;;  %p1555_p3 = pnand %p1554_p2, %p1548_p13 }
  0x43   : > { %1423 = vmatpush3.bf16.msra.mxu1 %v1422_v39  ;;  %1393 = vmatprep.subr.bf16.mxu0 %v1392_v40  ;;  %v698_v39 = vld [vmem:[%s2380_s3] sm:$0xff]  ;;  %v1452_v41 = vpack.c.bf16 %v709_v38, %v701_v36 }
  0x44   : > { %1425 = vmatprep.subr.bf16.mxu1 %v1424_v44  ;;  %v706_v40 = vld [vmem:[%s2380_s3 + $0x40] sm:$0xff]  ;;  %v708_v44 = vld [vmem:[%s2380_s3 + $0x50] sm:$0xff] }
  0x45   : > { %v1438_v42 = vpack.c.bf16 %v706_v40, %v698_v39  ;;  %v1454_v45 = vpack.c.bf16 %v708_v44, %v700_v43  ;;  %v702_v38 = vld [vmem:[%s2380_s3 + $0x20] sm:$0xff]  ;;  %v704_v40 = vld [vmem:[%s2380_s3 + $0x30] sm:$0xff]  ;;  %v727_v43 = vld [vmem:[%s2380_s3 + $0xe8] sm:$0xff] }
  0x46   : > { %1395 = vmatpush3.bf16.msra.mxu0 %v1394_v52  ;;  %v725_v52 = vld [vmem:[%s2380_s3 + $0xd8] sm:$0xff]  ;;  %v710_v39 = vld [vmem:[%s2380_s3 + $0x60] sm:$0xff] }
  0x47   : > { %1427 = vmatpush3.bf16.msra.mxu1 %v1426_v53  ;;  %1397 = vmatprep.subr.bf16.mxu0 %v1396_v54  ;;  %v714_v53 = vld [vmem:[%s2380_s3 + $0x80] sm:$0xff]  ;;  %v1456_v55 = vpack.c.bf16 %v725_v52, %v717_v50  ;;  %v721_v44 = vld [vmem:[%s2380_s3 + $0xb8] sm:$0xff]  ;;  %v1470_v46 = vpack.c.bf16 %v710_v39, %v702_v38 }
  0x48   : > { %1429 = vmatprep.subr.bf16.mxu1 %v1428_v58  ;;  %v722_v54 = vld [vmem:[%s2380_s3 + $0xc0] sm:$0xff]  ;;  %v724_v58 = vld [vmem:[%s2380_s3 + $0xd0] sm:$0xff] }
  0x49   : > { %v1442_v56 = vpack.c.bf16 %v722_v54, %v714_v53  ;;  %v1458_v59 = vpack.c.bf16 %v724_v58, %v716_v57  ;;  %v718_v50 = vld [vmem:[%s2380_s3 + $0xa0] sm:$0xff]  ;;  %v720_v54 = vld [vmem:[%s2380_s3 + $0xb0] sm:$0xff]  ;;  %v743_v58 = vld [vmem:[%s2380_s3 + $0x168] sm:$0xff] }
  0x4a   : > { %1399 = vmatpush3.bf16.msra.mxu0 %v1398_v0  ;;  %v741_v0 = vld [vmem:[%s2380_s3 + $0x158] sm:$0xff] }
  0x4b   : > { %1431 = vmatpush3.bf16.msra.mxu1 %v1430_v1  ;;  %1401 = vmatprep.subr.bf16.mxu0 %v1400_v2  ;;  %v730_v1 = vld [vmem:[%s2380_s3 + $0x100] sm:$0xff]  ;;  %v1460_v3 = vpack.c.bf16 %v741_v0, %v733_v62 }
  0x4c   : > { %1433 = vmatprep.subr.bf16.mxu1 %v1432_v5  ;;  %v738_v2 = vld [vmem:[%s2380_s3 + $0x140] sm:$0xff]  ;;  %v732_v5 = vld [vmem:[%s2380_s3 + $0x110] sm:$0xff] }
  0x4d   : > { %v1446_v4 = vpack.c.bf16 %v738_v2, %v730_v1  ;;  %v742_v0 = vld [vmem:[%s2380_s3 + $0x160] sm:$0xff] }
  0x4e   : > { %1403 = vmatpush3.bf16.msra.mxu0 %v1402_v8  ;;  %v1462_v8 = vpack.c.bf16 %v740_v6, %v732_v5  ;;  %v751_v5 = vld [vmem:[%s2380_s3 + $0x1a8] sm:$0xff] }
  0x4f   : > { %1435 = vmatpush3.bf16.msra.mxu1 %v1434_v9  ;;  %1303 = vmatprep.subr.mxu0 %v1609_v13  ;;  %v755_v9 = vld [vmem:[%s2380_s3 + $0x1c8] sm:$0xff] }
  0x50   : > { %1437 = vmatprep.subr.bf16.mxu1 %v1436_v37  ;;  %v759_v6 = vld [vmem:[%s2380_s3 + $0x1e8] sm:$0xff] }
  0x51   : > { %537 = vmatmul.mubr.f32.vlgmr.msra.gmra.mrb[2].mxu0 %v2106_v10 }
  0x52   : > { %607 = vmatmul.mubr.f32.vlgmr.msra.gmra.mrb[2].mxu1 %v2109_v11  ;;  %1305 = vmatprep.mubr.msk.f32.mxu0 %vm1610_vm1, %v1609_v13 }
  0x53   : > { %1304 = vmatpush3.msk.msra.mxu0 %vm618_vm0, %v613_v12  ;;  %830 = vmatprep.mubr.f32.mxu1 %v1609_v13  ;;  %v749_v12 = vld [vmem:[%s2380_s3 + $0x198] sm:$0xff] }
  0x54   : > { %1453 = vmatprep.subr.bf16.mxu0 %v1452_v41  ;;  %1439 = vmatpush1.bf16.msra.mxu1 %v1438_v42  ;;  %v712_v41 = vld [vmem:[%s2380_s3 + $0x70] sm:$0xff]  ;;  %v719_v42 = vld [vmem:[%s2380_s3 + $0xa8] sm:$0xff] }
  0x55   : > { %1441 = vmatprep.subr.bf16.mxu1 %v1440_v51  ;;  %v1486_v47 = vpack.c.bf16 %v712_v41, %v704_v40  ;;  %v726_v51 = vld [vmem:[%s2380_s3 + $0xe0] sm:$0xff]  ;;  %v1472_v52 = vpack.c.bf16 %v727_v43, %v719_v42 }
  0x56   : > { %v1474_v61 = vpack.c.bf16 %v726_v51, %v718_v50 }
  0x58   : > { %1443 = vmatpush1.bf16.msra.mxu1 %v1442_v56  ;;  %v735_v56 = vld [vmem:[%s2380_s3 + $0x128] sm:$0xff] }
  0x59   : > { %1445 = vmatprep.subr.bf16.mxu1 %v1444_v63  ;;  %v734_v63 = vld [vmem:[%s2380_s3 + $0x120] sm:$0xff]  ;;  %v1476_v1 = vpack.c.bf16 %v743_v58, %v735_v56 }
  0x5c   : > { %1447 = vmatpush1.bf16.msra.mxu1 %v1446_v4  ;;  %v744_v4 = vld [vmem:[%s2380_s3 + $0x170] sm:$0xff] }
 0x104   : > { %v1193_v14 = vpop.f32.mrb[0].mxu0 }
 0x105   : > { %v1228_v15 = vpop.f32.mrb[0].mxu1  ;;  %v1194_v18 = vpop.f32.mrb[1].mxu0 }
 0x106   : > { %v1195_v19 = vadd.f32 %v1194_v18, %v1193_v14  ;;  %v1229_v20 = vpop.f32.mrb[1].mxu1  ;;  %v757_v14 = vld [vmem:[%s2380_s3 + $0x1d8] sm:$0xff] }
 0x107   : > { %v1230_v21 = vadd.f32 %v1229_v20, %v1228_v15  ;;  %v1448_v15 = vpack.c.bf16 %v755_v9, %v747_v7  ;;  %v1464_v18 = vpack.c.bf16 %v757_v14, %v749_v12  ;;  %v754_v20 = vld [vmem:[%s2380_s3 + $0x1c0] sm:$0xff]  ;;  %v753_v7 = vld [vmem:[%s2380_s3 + $0x1b8] sm:$0xff]  ;;  %v1478_v9 = vpack.c.bf16 %v742_v0, %v734_v63 }
 0x108   : > { %v750_v14 = vld [vmem:[%s2380_s3 + $0x1a0] sm:$0xff] }
 0x109   : > { %v469_v22 = vadd.f32 %v1230_v21, %v1195_v19  ;;  %v746_v19 = vld [vmem:[%s2380_s3 + $0x180] sm:$0xff]  ;;  %v748_v21 = vld [vmem:[%s2380_s3 + $0x190] sm:$0xff]  ;;  %1449 = vmatprep.subr.bf16.mxu1 %v1448_v15  ;;  %v1480_v15 = vpack.c.bf16 %v759_v6, %v751_v5 }
 0x124   : > { %v1263_v23 = vpop.f32.mrb[2].mxu0 }
 0x125   : > { %v1264_v24 = vpop.f32.mrb[3].mxu0  ;;  %v1298_v27 = vpop.f32.mrb[2].mxu1 }
 0x126   : > { %v1265_v28 = vadd.f32 %v1264_v24, %v1263_v23  ;;  %v1299_v29 = vpop.f32.mrb[3].mxu1  ;;  %v756_v23 = vld [vmem:[%s2380_s3 + $0x1d0] sm:$0xff]  ;;  %v703_v24 = vld [vmem:[%s2380_s3 + $0x28] sm:$0xff] }
 0x127   : > { %v1300_v30 = vadd.f32 %v1299_v29, %v1298_v27  ;;  %v711_v27 = vld [vmem:[%s2380_s3 + $0x68] sm:$0xff] }
 0x128   : > { %v539_v31 = vadd.f32 %v1265_v28, %v469_v22  ;;  %v1450_v22 = vpack.c.bf16 %v754_v20, %v746_v19  ;;  %v1466_v28 = vpack.c.bf16 %v756_v23, %v748_v21  ;;  %v1468_v29 = vpack.c.bf16 %v711_v27, %v703_v24  ;;  %v758_v19 = vld [vmem:[%s2380_s3 + $0x1e0] sm:$0xff]  ;;  %v760_v20 = vld [vmem:[%s2380_s3 + $0x1f0] sm:$0xff] }
 0x129   : > { %v1482_v21 = vpack.c.bf16 %v758_v19, %v750_v14 }
 0x12a   : > { %v609_v32 = vadd.f32 %v1300_v30, %v539_v31  ;;  %v705_v30 = vld [vmem:[%s2380_s3 + $0x38] sm:$0xff]  ;;  %1451 = vmatpush1.bf16.msra.mxu1 %v1450_v22 }
 0x12b   : > { %v713_v31 = vld [vmem:[%s2380_s3 + $0x78] sm:$0xff]  ;;  %1469 = vmatprep.subr.bf16.mxu1 %v1468_v29 }
 0x12c   : > { %v612_v33 = vmax.f32 %v609_v32, 0.0  ;;  %v1484_v32 = vpack.c.bf16 %v713_v31, %v705_v30 }
 0x12e   : > { %1306 = vmatmul.mubr.msk.f32.vlgmr.msra.gmra.mrb[4].mxu0 %vm614_vm2, %v612_v33 }
 0x12f   : > { %901 = vmatprep.mubr.f32.mxu0 %v1609_v13  ;;  %1455 = vmatpush1.bf16.msra.mxu0 %v1454_v45  ;;  %v729_v45 = vld [vmem:[%s2380_s3 + $0xf8] sm:$0xff] }
 0x130   : > { %1457 = vmatprep.subr.bf16.mxu0 %v1456_v55  ;;  %v1488_v53 = vpack.c.bf16 %v729_v45, %v721_v44  ;;  %v728_v55 = vld [vmem:[%s2380_s3 + $0xf0] sm:$0xff] }
 0x131   : > { %v1490_v62 = vpack.c.bf16 %v728_v55, %v720_v54 }
 0x133   : > { %1459 = vmatpush1.bf16.msra.mxu0 %v1458_v59  ;;  %v737_v59 = vld [vmem:[%s2380_s3 + $0x138] sm:$0xff] }
 0x134   : > { %1461 = vmatprep.subr.bf16.mxu0 %v1460_v3  ;;  %v1492_v2 = vpack.c.bf16 %v745_v60, %v737_v59  ;;  %v736_v3 = vld [vmem:[%s2380_s3 + $0x130] sm:$0xff] }
 0x135   : > { %v1494_v12 = vpack.c.bf16 %v744_v4, %v736_v3 }
 0x137   : > { %1463 = vmatpush1.bf16.msra.mxu0 %v1462_v8  ;;  %v761_v8 = vld [vmem:[%s2380_s3 + $0x1f8] sm:$0xff] }
 0x138   : > { %1465 = vmatprep.subr.bf16.mxu0 %v1464_v18  ;;  %v1496_v18 = vpack.c.bf16 %v761_v8, %v753_v7 }
 0x13b   : > { %1467 = vmatpush1.bf16.msra.mxu0 %v1466_v28 }
 0x13c   : > { %1485 = vmatprep.subr.bf16.mxu0 %v1484_v32 }
 0x201   : > { %v688_v33 = vpop.f32.mrb[4].mxu0 }
 0x202   : > { %v1149_v34 = vmul.f32 -1.442695, %v688_v33  ;;  %v1307_v35 = vpop.f32.mrb[5].mxu0 }
 0x204   : > { %1541 = vpow2.f32 %v1149_v34 }
 0x20e   : > { %v1542_v36 = vpop.eup %1541 }
 0x20f   : > { %v695_v37 = vadd.f32 1.0, %v1542_v36 }
 0x211   : > { %1543 = vrcp.f32 %v695_v37 }
 0x21b   : > { %v1544_v57 = vpop.eup %1543 }
 0x21c   : > { %1150 = vmatmul.mubr.msk.f32.vlgmr.msra.gmra.mrb[4].mxu1 %vm762_vm3, %v1544_v57  ;;  %1151 = vmatmul.mubr.msk.f32.vlgmr.msra.gmra.mrb[6].mxu0 %vm762_vm3, %v1544_v57 }
 0x21d   : > { %1471 = vmatpush1.bf16.msra.mxu1 %v1470_v46  ;;  %1487 = vmatpush1.bf16.msra.mxu0 %v1486_v47 }
 0x21e   : > { %1473 = vmatprep.subr.bf16.mxu1 %v1472_v52  ;;  %1489 = vmatprep.subr.bf16.mxu0 %v1488_v53 }
 0x21f   : > { %972 = vmatprep.mubr.f32.mxu1 %v1609_v13  ;;  %1043 = vmatprep.mubr.f32.mxu0 %v1609_v13  ;;  %v752_v13 = vld [vmem:[%s2380_s3 + $0x1b0] sm:$0xff] }
 0x220   : > { %v1498_v22 = vpack.c.bf16 %v760_v20, %v752_v13 }
 0x221   : > { %1475 = vmatpush1.bf16.msra.mxu1 %v1474_v61  ;;  %1491 = vmatpush1.bf16.msra.mxu0 %v1490_v62 }
 0x222   : > { %1477 = vmatprep.subr.bf16.mxu1 %v1476_v1  ;;  %1493 = vmatprep.subr.bf16.mxu0 %v1492_v2 }
 0x225   : > { %1479 = vmatpush1.bf16.msra.mxu1 %v1478_v9  ;;  %1495 = vmatpush1.bf16.msra.mxu0 %v1494_v12 }
 0x226   : > { %1481 = vmatprep.subr.bf16.mxu1 %v1480_v15  ;;  %1497 = vmatprep.subr.bf16.mxu0 %v1496_v18 }
 0x229   : > { %1483 = vmatpush1.bf16.msra.mxu1 %v1482_v21  ;;  %1499 = vmatpush1.bf16.msra.mxu0 %v1498_v22 }
 0x22c   : > { %1152 = vmatmul.mubr.msk.f32.vlgmr.msra.gmra.mrb[6].mxu1 %vm762_vm3, %v1544_v57  ;;  %1153 = vmatmul.mubr.msk.f32.vlgmr.msra.gmra.mrb[8].mxu0 %vm762_vm3, %v1544_v57 }
 0x2ef   : > { %v832_v23 = vpop.f32.mrb[4].mxu1  ;;  %v903_v24 = vpop.f32.mrb[6].mxu0 }
 0x2f0   : > { %v1050_v27 = vmul.f32 %v832_v23, %v1934_v48  ;;  %v1052_v28 = vmul.f32 %v903_v24, %v1937_v49  ;;  %v834_v29 = vpop.f32.mrb[5].mxu1  ;;  %v905_v30 = vpop.f32.mrb[7].mxu0 }
 0x2f1   : > { %v1051_v31 = vmul.f32 %v834_v29, %v1863_v16  ;;  %v1053_v32 = vmul.f32 %v905_v30, %v1866_v17 }
 0x2f2   : > { %1058 = vst [vmem:[%s190_s6] sm:$0xff] %v1050_v27  ;;  %1060 = vst [vmem:[%s190_s6 + $0x10] sm:$0xff] %v1052_v28 }
 0x2f3   : > { %1059 = vst [vmem:[%s190_s6 + $0x8] sm:$0xff] %v1051_v31  ;;  %1061 = vst [vmem:[%s190_s6 + $0x18] sm:$0xff] %v1053_v32 }
 0x2ff   : > { %v974_v33 = vpop.f32.mrb[6].mxu1  ;;  %v1045_v34 = vpop.f32.mrb[8].mxu0 }
 0x300   : > { %v1054_v48 = vmul.f32 %v974_v33, %v2106_v10  ;;  %v1056_v49 = vmul.f32 %v1045_v34, %v2109_v11  ;;  %v976_v35 = vpop.f32.mrb[7].mxu1  ;;  %v1047_v36 = vpop.f32.mrb[9].mxu0 }
 0x301   : > { %v1055_v16 = vmul.f32 %v976_v35, %v2014_v25  ;;  %v1057_v17 = vmul.f32 %v1047_v36, %v2017_v26 }
 0x302   : > { %1062 = vst [vmem:[%s190_s6 + $0x20] sm:$0xff] %v1054_v48  ;;  %1064 = vst [vmem:[%s190_s6 + $0x30] sm:$0xff] %v1056_v49 }
 0x303   : > { %1063 = vst [vmem:[%s190_s6 + $0x28] sm:$0xff] %v1055_v16  ;;  %1065 = vst [vmem:[%s190_s6 + $0x38] sm:$0xff] %v1057_v17 }
 0x304   : > { %1558 = shalt.err (!%p1555_p3)
}
 0x305   : > { %s1559_s7 = scalar_lea.hbm %s2333_s23, 1024  ;;  %s1563_s10 = scalar_lea.hbm %s2381_s4, 2048 }
 0x306   : > { %p1560_p4 = scmp.ne.s32.totalorder %s2333_s23, %s1559_s7  ;;  %p1564_p9 = scmp.lt.u32.totalorder %s2333_s23, %s2381_s4 }
 0x307   : > { %p1565_p10 = scmp.lt.u32.totalorder %s1563_s10, %s1559_s7  ;;  %p1567_p12 = scmp.lt.u32.totalorder %s1559_s7, %s2333_s23 }
 0x308   : > { %p1561_p7 = pnand %p1560_p4, %p1675_p5 }
 0x309   : > { %p1566_p11 = por %p1565_p10, %p1564_p9 }
 0x30a   : > { %p1562_p8 = pneg %p1561_p7 }
 0x30b   : > { %p1568_p13 = por %p1567_p12, %p1566_p11 }
 0x30d   : > { %p1569_p0 = pnand %p1568_p13, %p1562_p8 }
 0x30f   : > { %1572 = shalt.err (!%p1569_p0)
}
 0x310   : > { %1500 = dma.vmem_to_hbm [thread:$0]  (%p1675_p5), %s2335_s14, 1024, %s2333_s23, %s1067_s19  }
 0x311 PF: > { %p1506_p1 = scmp.ge.s32.totalorder %s1607_s18, 2  ;;  %s1093_s5 = sand.u32 1, %s1595_s15  }
 0x312   : > { %s1094_s6 = scalar_lea.sflag [#allocation3], %s1093_s5 }
 0x313   : > { %p1503_p2 = pnand %p1506_p1, %p1679_p6 }
 0x315   : > { %1590 = dma.done.wait (!%p1503_p2), %s1094_s6, 1024  }
 0x316   : > { %1592 = vsyncadd (!%p1503_p2), %s1094_s6, 4294966272  ;;  %p14_p3 = scmp.ge.s32.totalorder %s1662_s21, 4   ;;  %s2384_s15 = smov %s1599_s16 }
 0x317   : > { %s2385_s16 = smov %s1603_s17  ;;  %s2386_s17 = smov %s1673_s24 }
 0x318   : > { %s2387_s18 = smov %s1662_s21  ;;  %16 = sbr.rel (!%p14_p3) target bundleno = 3 (0x3), region = 71 }
 0x31f   :  { %1099 = vsyncpa [#allocation3], 1 }
 0x320   :  { %1101 = vsyncpa [#allocation3 + $0x1], 1 }

</bundles_post_ra>
